<compile_context>
chip_gen: v6e
topology: v6e:2x2x1
jax: 0.10.0
libtpu: 0.0.40
codegen_flags: <defaults>
</compile_context>

<pallas_src>
import functools

import jax
import jax.numpy as jnp
from jax.experimental import pallas as pl
from jax.experimental.pallas import tpu as pltpu


_VMEM_LIMIT = 48 * 1024 * 1024  # safe on v5e/v6e (128 MiB) and v7x (64 MiB) VMEM


def _conv_stats_kernel(p_ref, w_ref, b_ref, y_ref, stat_ref):
    """One row-tile of the sub-pixel conv-as-matmul.

    y = patches @ W_all + bias   (bf16 inputs, f32 MXU accumulate)
    Also writes this tile's per-column partial sum / sum-of-squares into rows
    0/1 of an (8, C_all) stats block, so BatchNorm batch statistics are reduced
    in the wrapper and the grid axis stays "parallel" (no resident accumulator).
    """
    y = jnp.dot(p_ref[...], w_ref[...], preferred_element_type=jnp.float32)
    y = y + b_ref[...]                         # (tm, C_all) + (1, C_all)
    y_ref[...] = y.astype(y_ref.dtype)         # bf16 intermediate -> half HBM traffic

    stat_ref[...] = jnp.zeros_like(stat_ref)
    stat_ref[0:1, :] = jnp.sum(y, axis=0, keepdims=True)
    stat_ref[1:2, :] = jnp.sum(y * y, axis=0, keepdims=True)


def _bn_relu_kernel(y_ref, scale_ref, shift_ref, o_ref):
    """Fused BatchNorm affine (precomputed scale/shift) + ReLU, lane-dense tiles."""
    y = y_ref[...].astype(jnp.float32)
    o_ref[...] = jnp.maximum(y * scale_ref[...] + shift_ref[...], 0.0)


def _subpixel_weights(weight, bias, cout_pad):
    """Fold Upsample(x2, nearest) + Conv2d(3x3, pad=1) into 4 phase convolutions
    on the original resolution, packed as one (9*Cin, 4*cout_pad) matrix.

    Output pixel (2i+a, 2j+b): conv tap kh reads upsampled row 2i+a-1+kh, i.e.
    original row i + floor((a-1+kh)/2) (same for columns).  Summing the 3x3
    weights that land on the same original-offset tap gives, per phase (a, b),
    an effective kernel supported on a 2x2 sub-block of the 3x3 neighbourhood.
    """
    cout, cin = weight.shape[0], weight.shape[1]
    w_khkw = jnp.transpose(weight, (2, 3, 1, 0)).astype(jnp.float32)  # (3,3,Cin,Cout)
    w_eff = jnp.zeros((3, 3, cin, 4, cout_pad), jnp.float32)
    for a in (0, 1):
        for b in (0, 1):
            for kh in range(3):
                r = (a - 1 + kh) // 2          # original row offset in {-1, 0, 1}
                for kw in range(3):
                    s = (b - 1 + kw) // 2      # original col offset
                    w_eff = w_eff.at[r + 1, s + 1, :, 2 * a + b, :cout].add(
                        w_khkw[kh, kw])
    wmat = w_eff.reshape(9 * cin, 4 * cout_pad)

    b_pad = jnp.zeros((cout_pad,), jnp.float32).at[:cout].set(
        bias.astype(jnp.float32))
    brow = jnp.tile(b_pad, (4,)).reshape(1, 4 * cout_pad)
    return wmat, brow


@functools.partial(jax.jit, static_argnames=("eps", "tm"))
def up_conv_forward(x, weight, bias, gamma, beta, *, eps=1e-5, tm=512):
    """x: (N, Cin, H, W) f32.  weight: (Cout, Cin, 3, 3), bias/gamma/beta: (Cout,).
    Returns (N, Cout, 2H, 2W) f32 (PyTorch NCHW convention)."""
    N, Cin, H, W = x.shape
    Cout = weight.shape[0]
    K = 9 * Cin
    # Lane-dense packing: 4 sub-pixel phases * Cout_pad channels = multiple of 128.
    Cout_pad = ((Cout + 31) // 32) * 32
    C_all = 4 * Cout_pad

    # ---- layout glue at ORIGINAL resolution (no 2x-upsampled tensor in HBM) ----
    # NOTE: keeping NHWC end-to-end would remove the entry/exit transposes.
    x_nhwc = jnp.transpose(x, (0, 2, 3, 1)).astype(jnp.float32)
    x_pad = jnp.pad(x_nhwc, ((0, 0), (1, 1), (1, 1), (0, 0)))
    taps = [x_pad[:, tr:tr + H, ts:ts + W, :] for tr in range(3) for ts in range(3)]
    M = N * H * W
    patches = jnp.concatenate(taps, axis=-1).reshape(M, K).astype(jnp.bfloat16)

    # Row tiling with padding (no shape-brittle divisibility assert).
    tm = min(tm, max(128, ((M + 127) // 128) * 128))
    Gm = pl.cdiv(M, tm)
    M_pad = Gm * tm
    if M_pad != M:
        patches = jnp.pad(patches, ((0, M_pad - M), (0, 0)))

    wmat_f32, brow = _subpixel_weights(weight, bias, Cout_pad)
    wmat = wmat_f32.astype(jnp.bfloat16)

    # ---- kernel 1: sub-pixel conv matmul + bias + per-block partial stats ----
    y, stats = pl.pallas_call(
        _conv_stats_kernel,
        out_shape=(jax.ShapeDtypeStruct((M_pad, C_all), jnp.bfloat16),
                   jax.ShapeDtypeStruct((8 * Gm, C_all), jnp.float32)),
        grid=(Gm,),
        in_specs=[pl.BlockSpec((tm, K), lambda i: (i, 0)),
                  pl.BlockSpec((K, C_all), lambda i: (0, 0)),
                  pl.BlockSpec((1, C_all), lambda i: (0, 0))],
        out_specs=(pl.BlockSpec((tm, C_all), lambda i: (i, 0)),
                   pl.BlockSpec((8, C_all), lambda i: (i, 0))),
        compiler_params=pltpu.CompilerParams(
            dimension_semantics=("parallel",),
            vmem_limit_bytes=_VMEM_LIMIT),
    )(patches, wmat, brow)

    # ---- BatchNorm2d training-mode batch statistics (biased variance) ----
    stats = stats.reshape(Gm, 8, C_all)
    col_sum = jnp.sum(stats[:, 0, :], axis=0)
    col_ssq = jnp.sum(stats[:, 1, :], axis=0)
    # Remove the exact contribution of zero-padded rows (their y is exactly bias).
    n_pad = jnp.float32(M_pad - M)
    col_sum = col_sum - n_pad * brow[0]
    col_ssq = col_ssq - n_pad * brow[0] ** 2
    # Fold the 4 phases: statistics are over all 4*M output pixels per channel.
    sum_c = jnp.sum(col_sum.reshape(4, Cout_pad)[:, :Cout], axis=0)
    ssq_c = jnp.sum(col_ssq.reshape(4, Cout_pad)[:, :Cout], axis=0)
    count = jnp.float32(4 * M)
    mean = sum_c / count
    var = ssq_c / count - mean * mean   # adequate here; two-pass form is more robust
    scale_c = gamma.astype(jnp.float32) / jnp.sqrt(var + eps)
    shift_c = beta.astype(jnp.float32) - mean * scale_c
    scale_row = jnp.tile(
        jnp.zeros((Cout_pad,), jnp.float32).at[:Cout].set(scale_c), (4,)
    ).reshape(1, C_all)
    shift_row = jnp.tile(
        jnp.zeros((Cout_pad,), jnp.float32).at[:Cout].set(shift_c), (4,)
    ).reshape(1, C_all)

    # ---- kernel 2: fused BN affine + ReLU (128-lane dense blocks) ----
    out_flat = pl.pallas_call(
        _bn_relu_kernel,
        out_shape=jax.ShapeDtypeStruct((M_pad, C_all), jnp.float32),
        grid=(Gm,),
        in_specs=[pl.BlockSpec((tm, C_all), lambda i: (i, 0)),
                  pl.BlockSpec((1, C_all), lambda i: (0, 0)),
                  pl.BlockSpec((1, C_all), lambda i: (0, 0))],
        out_specs=pl.BlockSpec((tm, C_all), lambda i: (i, 0)),
        compiler_params=pltpu.CompilerParams(
            dimension_semantics=("parallel",),
            vmem_limit_bytes=_VMEM_LIMIT),
    )(y, scale_row, shift_row)

    # ---- un-phase: row (n,i,j), phase (a,b) is output pixel (2i+a, 2j+b) ----
    out = out_flat[:M].reshape(N, H, W, 2, 2, Cout_pad)[..., :Cout]
    out = jnp.transpose(out, (0, 5, 1, 3, 2, 4)).reshape(N, Cout, 2 * H, 2 * W)
    return out


def up_conv_reference(x, weight, bias, gamma, beta, eps=1e-5):
    """Pure-JAX f32 reference mirroring the PyTorch forward (train-mode BN)."""
    x_up = jnp.repeat(jnp.repeat(x, 2, axis=2), 2, axis=3)
    y = jax.lax.conv_general_dilated(
        x_up, weight, window_strides=(1, 1), padding=((1, 1), (1, 1)),
        dimension_numbers=("NCHW", "OIHW", "NCHW"))
    y = y + bias.reshape(1, -1, 1, 1)
    mean = jnp.mean(y, axis=(0, 2, 3), keepdims=True)
    var = jnp.mean((y - mean) ** 2, axis=(0, 2, 3), keepdims=True)
    y = gamma.reshape(1, -1, 1, 1) * (y - mean) / jnp.sqrt(var + eps) \
        + beta.reshape(1, -1, 1, 1)
    return jnp.maximum(y, 0.0)


if __name__ == "__main__":
    N, Cin, Cout, H, W = 2, 4, 8, 16, 16

    key = jax.random.PRNGKey(0)
    kx, kw, kb = jax.random.split(key, 3)
    x = jax.random.normal(kx, (N, Cin, H, W), dtype=jnp.float32)
    weight = 0.1 * jax.random.normal(kw, (Cout, Cin, 3, 3), dtype=jnp.float32)
    bias = 0.1 * jax.random.normal(kb, (Cout,), dtype=jnp.float32)
    gamma = jnp.ones((Cout,), dtype=jnp.float32)   # BatchNorm2d default init
    beta = jnp.zeros((Cout,), dtype=jnp.float32)

    out = up_conv_forward(x, weight, bias, gamma, beta)
    out = jax.block_until_ready(out)

    ref = up_conv_reference(x, weight, bias, gamma, beta)
    assert out.shape == (N, Cout, 2 * H, 2 * W), out.shape
    max_err = float(jnp.max(jnp.abs(out - ref)))
    # bf16 matmul inputs + bf16 y intermediate (f32 accumulation) -> looser tol.
    assert jnp.allclose(out, ref, rtol=2e-2, atol=3e-2), max_err

    print("KERNEL_OK")
</pallas_src>

<mosaic_0001>
module attributes {stable_mosaic.version = 11 : i64} {
  func.func @_conv_stats_kernel(%arg0: i32, %arg1: memref<512x36xbf16, #tpu.memory_space<vmem>>, %arg2: memref<36x128xbf16, #tpu.memory_space<vmem>>, %arg3: memref<1x128xf32, #tpu.memory_space<vmem>>, %arg4: memref<512x128xbf16, #tpu.memory_space<vmem>>, %arg5: memref<8x128xf32, #tpu.memory_space<vmem>>) attributes {dimension_semantics = [#tpu.dimension_semantics<parallel>], iteration_bounds = array<i64: 1>, scalar_prefetch = 0 : i64, scratch_operands = 0 : i64, tpu.core_type = #tpu.core_type<tc>, window_params = [{transform_indices = @transform_0, window_bounds = array<i64: 512, 36>}, {pipeline_mode = #tpu.pipeline_mode<synchronous>, transform_indices = @transform_1, window_bounds = array<i64: 36, 128>}, {pipeline_mode = #tpu.pipeline_mode<synchronous>, transform_indices = @transform_2, window_bounds = array<i64: 1, 128>}, {transform_indices = @transform_3, window_bounds = array<i64: 512, 128>}, {transform_indices = @transform_4, window_bounds = array<i64: 8, 128>}]} {
    %c0 = arith.constant 0 : index
    %c0_0 = arith.constant 0 : index
    %0 = vector.load %arg1[%c0, %c0_0] : memref<512x36xbf16, #tpu.memory_space<vmem>>, vector<512x36xbf16>
    %c0_1 = arith.constant 0 : index
    %c0_2 = arith.constant 0 : index
    %1 = vector.load %arg2[%c0_1, %c0_2] : memref<36x128xbf16, #tpu.memory_space<vmem>>, vector<36x128xbf16>
    %cst = arith.constant dense<0.000000e+00> : vector<512x128xf32>
    %2 = tpu.matmul %0, %1, %cst {dimension_numbers = #tpu.dot_dimension_numbers<[1], [0], [0], [1], [0, 0, 1, 1], [], []>} : vector<512x36xbf16>, vector<36x128xbf16>, vector<512x128xf32> -> vector<512x128xf32>
    %c0_3 = arith.constant 0 : index
    %c0_4 = arith.constant 0 : index
    %3 = vector.load %arg3[%c0_3, %c0_4] : memref<1x128xf32, #tpu.memory_space<vmem>>, vector<1x128xf32>
    %4 = vector.broadcast %3 : vector<1x128xf32> to vector<512x128xf32>
    %5 = arith.addf %2, %4 : vector<512x128xf32>
    %6 = arith.truncf %5 : vector<512x128xf32> to vector<512x128xbf16>
    %c0_5 = arith.constant 0 : index
    %c0_6 = arith.constant 0 : index
    %7 = vector.load %arg4[%c0_5, %c0_6] : memref<512x128xbf16, #tpu.memory_space<vmem>>, vector<512x128xbf16>
    tpu.vector_store %arg4[%c0_5, %c0_6], %6 {strides = array<i32>} : memref<512x128xbf16, #tpu.memory_space<vmem>>, vector<512x128xbf16>,
    %cst_7 = arith.constant 0.000000e+00 : f32
    %8 = vector.broadcast %cst_7 : f32 to vector<8x128xf32>
    %c0_8 = arith.constant 0 : index
    %c0_9 = arith.constant 0 : index
    %9 = vector.load %arg5[%c0_8, %c0_9] : memref<8x128xf32, #tpu.memory_space<vmem>>, vector<8x128xf32>
    tpu.vector_store %arg5[%c0_8, %c0_9], %8 {strides = array<i32>} : memref<8x128xf32, #tpu.memory_space<vmem>>, vector<8x128xf32>,
    %cst_10 = arith.constant dense<0.000000e+00> : vector<128xf32>
    %10 = vector.multi_reduction <add>, %5, %cst_10 [0] : vector<512x128xf32> to vector<128xf32>
    %11 = vector.shape_cast %10 : vector<128xf32> to vector<1x128xf32>
    %c0_11 = arith.constant 0 : index
    %c0_12 = arith.constant 0 : index
    %12 = vector.load %arg5[%c0_11, %c0_12] : memref<8x128xf32, #tpu.memory_space<vmem>>, vector<1x128xf32>
    tpu.vector_store %arg5[%c0_11, %c0_12], %11 {strides = array<i32>} : memref<8x128xf32, #tpu.memory_space<vmem>>, vector<1x128xf32>,
    %13 = arith.mulf %5, %5 : vector<512x128xf32>
    %cst_13 = arith.constant dense<0.000000e+00> : vector<128xf32>
    %14 = vector.multi_reduction <add>, %13, %cst_13 [0] : vector<512x128xf32> to vector<128xf32>
    %15 = vector.shape_cast %14 : vector<128xf32> to vector<1x128xf32>
    %c1 = arith.constant 1 : index
    %c0_14 = arith.constant 0 : index
    %16 = vector.load %arg5[%c1, %c0_14] : memref<8x128xf32, #tpu.memory_space<vmem>>, vector<1x128xf32>
    tpu.vector_store %arg5[%c1, %c0_14], %15 {strides = array<i32>} : memref<8x128xf32, #tpu.memory_space<vmem>>, vector<1x128xf32>,
    return
  }
  func.func @transform_0(%arg0: i32) -> (i32, i32) {
    %c0_i32 = arith.constant 0 : i32
    %c0_i32_0 = arith.constant 0 : i32
    return %arg0, %c0_i32 : i32, i32
  }
  func.func @transform_1(%arg0: i32) -> (i32, i32) {
    %c0_i32 = arith.constant 0 : i32
    %c0_i32_0 = arith.constant 0 : i32
    %c0_i32_1 = arith.constant 0 : i32
    return %c0_i32, %c0_i32_0 : i32, i32
  }
  func.func @transform_2(%arg0: i32) -> (i32, i32) {
    %c0_i32 = arith.constant 0 : i32
    %c0_i32_0 = arith.constant 0 : i32
    %c0_i32_1 = arith.constant 0 : i32
    return %c0_i32, %c0_i32_0 : i32, i32
  }
  func.func @transform_3(%arg0: i32) -> (i32, i32) {
    %c0_i32 = arith.constant 0 : i32
    %c0_i32_0 = arith.constant 0 : i32
    return %arg0, %c0_i32 : i32, i32
  }
  func.func @transform_4(%arg0: i32) -> (i32, i32) {
    %c0_i32 = arith.constant 0 : i32
    %c0_i32_0 = arith.constant 0 : i32
    return %arg0, %c0_i32 : i32, i32
  }
}

module attributes {stable_mosaic.version = 11 : i64} {
  func.func @_bn_relu_kernel(%arg0: i32, %arg1: memref<512x128xbf16, #tpu.memory_space<vmem>>, %arg2: memref<1x128xf32, #tpu.memory_space<vmem>>, %arg3: memref<1x128xf32, #tpu.memory_space<vmem>>, %arg4: memref<512x128xf32, #tpu.memory_space<vmem>>) attributes {dimension_semantics = [#tpu.dimension_semantics<parallel>], iteration_bounds = array<i64: 1>, scalar_prefetch = 0 : i64, scratch_operands = 0 : i64, tpu.core_type = #tpu.core_type<tc>, window_params = [{transform_indices = @transform_0, window_bounds = array<i64: 512, 128>}, {pipeline_mode = #tpu.pipeline_mode<synchronous>, transform_indices = @transform_1, window_bounds = array<i64: 1, 128>}, {pipeline_mode = #tpu.pipeline_mode<synchronous>, transform_indices = @transform_2, window_bounds = array<i64: 1, 128>}, {transform_indices = @transform_3, window_bounds = array<i64: 512, 128>}]} {
    %c0 = arith.constant 0 : index
    %c0_0 = arith.constant 0 : index
    %0 = vector.load %arg1[%c0, %c0_0] : memref<512x128xbf16, #tpu.memory_space<vmem>>, vector<512x128xbf16>
    %1 = arith.extf %0 : vector<512x128xbf16> to vector<512x128xf32>
    %c0_1 = arith.constant 0 : index
    %c0_2 = arith.constant 0 : index
    %2 = vector.load %arg2[%c0_1, %c0_2] : memref<1x128xf32, #tpu.memory_space<vmem>>, vector<1x128xf32>
    %3 = vector.broadcast %2 : vector<1x128xf32> to vector<512x128xf32>
    %4 = arith.mulf %1, %3 : vector<512x128xf32>
    %c0_3 = arith.constant 0 : index
    %c0_4 = arith.constant 0 : index
    %5 = vector.load %arg3[%c0_3, %c0_4] : memref<1x128xf32, #tpu.memory_space<vmem>>, vector<1x128xf32>
    %6 = vector.broadcast %5 : vector<1x128xf32> to vector<512x128xf32>
    %7 = arith.addf %4, %6 : vector<512x128xf32>
    %cst = arith.constant 0.000000e+00 : f32
    %8 = vector.broadcast %cst : f32 to vector<512x128xf32>
    %9 = arith.maximumf %7, %8 : vector<512x128xf32>
    %c0_5 = arith.constant 0 : index
    %c0_6 = arith.constant 0 : index
    %10 = vector.load %arg4[%c0_5, %c0_6] : memref<512x128xf32, #tpu.memory_space<vmem>>, vector<512x128xf32>
    tpu.vector_store %arg4[%c0_5, %c0_6], %9 {strides = array<i32>} : memref<512x128xf32, #tpu.memory_space<vmem>>, vector<512x128xf32>,
    return
  }
  func.func @transform_0(%arg0: i32) -> (i32, i32) {
    %c0_i32 = arith.constant 0 : i32
    %c0_i32_0 = arith.constant 0 : i32
    return %arg0, %c0_i32 : i32, i32
  }
  func.func @transform_1(%arg0: i32) -> (i32, i32) {
    %c0_i32 = arith.constant 0 : i32
    %c0_i32_0 = arith.constant 0 : i32
    %c0_i32_1 = arith.constant 0 : i32
    return %c0_i32, %c0_i32_0 : i32, i32
  }
  func.func @transform_2(%arg0: i32) -> (i32, i32) {
    %c0_i32 = arith.constant 0 : i32
    %c0_i32_0 = arith.constant 0 : i32
    %c0_i32_1 = arith.constant 0 : i32
    return %c0_i32, %c0_i32_0 : i32, i32
  }
  func.func @transform_3(%arg0: i32) -> (i32, i32) {
    %c0_i32 = arith.constant 0 : i32
    %c0_i32_0 = arith.constant 0 : i32
    return %arg0, %c0_i32 : i32, i32
  }
}

</mosaic_0001>

<bundles_post_ra>
// kernel: tile.20
= control target key start
LH: loop header
LB: loop body
LE: loop exit
PB: predicated region body
PF: predicated region fallthrough
CT: control target
= control target key end

     0   :  { %s22_s0 = inlined_call_operand.vmem [shape: f32[32], index: 0, kind: input, shape index: {}]   ;;  %s23_s1 = inlined_call_operand.vmem [shape: f32[4,32], index: 1, kind: output, shape index: {}]  }
   0x1   :  { %v4_v0 = vld [vmem:[%s22_s0] ss:$0 sm:$0xff] }
   0x2   :  { %5 = vst [vmem:[%s23_s1] sm:$0xf] %v4_v0 }

// kernel: tile.21
= control target key start
LH: loop header
LB: loop body
LE: loop exit
PB: predicated region body
PF: predicated region fallthrough
CT: control target
= control target key end

     0   :  { %vm8_vm0 = vcmask 261120   ;;  %s40_s8 = smov 32   ;;  %s41_s9 = smov 64   ;;  %vm14_vm1 = vcmask 1048320   ;;  %vm20_vm2 = vcmask 785920   ;;  %vm26_vm3 = vcmask 523520   ;;  %s58_s0 = inlined_call_operand.vmem [shape: f32[4,32], index: 0, kind: input, shape index: {}]   ;;  %s59_s1 = inlined_call_operand.vmem [shape: f32[1,128], index: 1, kind: output, shape index: {}]  }
   0x1   :  { %v5_v0 = vld [vmem:[%s58_s0] sm:$0xf]  ;;  %s39_s0 = smov 96  }
   0x2   :  { %6 = vst [vmem:[#allocation1] sm:$0xf] %v5_v0 }
   0x9   :  { %v11_v1 = vld [vmem:[#allocation1 + $0x3] sm:$0x1]   ;;  %v23_v2 = vld [vmem:[#allocation1 + $0x1] sm:$0x1]   ;;  %v7_v3 = vld [vmem:[#allocation1] sm:$0x1]  }
   0xa   :  { %12 = vrot.lane.b32.xlu0 %v11_v1, %s39_s0  ;;  %24 = vrot.lane.b32.xlu1 %v23_v2, %s40_s8  ;;  %v17_v4 = vld [vmem:[#allocation1 + $0x2] sm:$0x1]   ;;  %9 = vst.msk [vmem:[#allocation0] sm:$0x1] %vm8_vm0, %v7_v3  }
   0xe   :  { %18 = vrot.lane.b32.xlu0 %v17_v4, %s41_s9 }
  0x7c   :  { %v13_v5 = vpop.permute.xlu0 %12   ;;  %v25_v6 = vpop.permute.xlu1 %24  }
  0x7d   :  { %15 = vst.msk [vmem:[#allocation0] sm:$0x1] %vm14_vm1, %v13_v5  }
  0x80   :  { %v19_v7 = vpop.permute.xlu0 %18  }
  0x81   :  { %21 = vst.msk [vmem:[#allocation0] sm:$0x1] %vm20_vm2, %v19_v7  }
  0x82   :  { %27 = vst.msk [vmem:[#allocation0] sm:$0x1] %vm26_vm3, %v25_v6  }
  0x89   :  { %v32_v8 = vld [vmem:[#allocation0] sm:$0x1] }
  0x8a   :  { %35 = vst [vmem:[%s59_s1] sm:$0x1] %v32_v8 }

// kernel: up_conv_forward.3
= control target key start
LH: loop header
LB: loop body
LE: loop exit
PB: predicated region body
PF: predicated region fallthrough
CT: control target
= control target key end

     0   :  { %s1023_s0 = inlined_call_operand.vmem [shape: bf16[512,128], index: 0, kind: input, shape index: {}]   ;;  %s1024_s1 = inlined_call_operand.vmem [shape: f32[1,128], index: 1, kind: input, shape index: {}]   ;;  %s1025_s2 = inlined_call_operand.vmem [shape: f32[1,128], index: 2, kind: input, shape index: {}]   ;;  %s1026_s3 = inlined_call_operand.vmem [shape: f32[512,128], index: 3, kind: output, shape index: {}]  }
   0x1   :  { %v419_v0 = vld [vmem:[%s1023_s0] sm:$0xff]   ;;  %v546_v4 = vld [vmem:[%s1023_s0 + $0x8] sm:$0xff]   ;;  %v547_v5 = vld [vmem:[%s1023_s0 + $0x10] sm:$0xff]  }
   0x2   :  { %v603_v1 = vld [vmem:[%s1024_s1] ss:$0 sm:$0xff]  ;;  %v420_v2 = vunpack.c.l.bf16 %v419_v0  ;;  %v421_v3 = vunpack.c.h.bf16 %v419_v0  ;;  %v548_v6 = vld [vmem:[%s1023_s0 + $0x18] sm:$0xff]   ;;  %v424_v8 = vunpack.c.l.bf16 %v546_v4  ;;  %v425_v9 = vunpack.c.h.bf16 %v546_v4  ;;  %v550_v33 = vld [vmem:[%s1023_s0 + $0x28] sm:$0xff]  }
   0x3   :  { %v617_v7 = vld [vmem:[%s1025_s2] ss:$0 sm:$0xff]  ;;  %v428_v10 = vunpack.c.l.bf16 %v547_v5  ;;  %v429_v11 = vunpack.c.h.bf16 %v547_v5  ;;  %v432_v14 = vunpack.c.l.bf16 %v548_v6  ;;  %v433_v15 = vunpack.c.h.bf16 %v548_v6  ;;  %v551_v34 = vld [vmem:[%s1023_s0 + $0x30] sm:$0xff]   ;;  %v552_v39 = vld [vmem:[%s1023_s0 + $0x38] sm:$0xff]  }
   0x4   :  { %v149_v12 = vmul.f32 %v420_v2, %v603_v1  ;;  %v150_v13 = vmul.f32 %v421_v3, %v603_v1  ;;  %v151_v16 = vmul.f32 %v424_v8, %v603_v1  ;;  %v152_v17 = vmul.f32 %v425_v9, %v603_v1  ;;  %v549_v28 = vld [vmem:[%s1023_s0 + $0x20] sm:$0xff]   ;;  %v554_v6 = vld [vmem:[%s1023_s0 + $0x48] sm:$0xff]   ;;  %v555_v8 = vld [vmem:[%s1023_s0 + $0x50] sm:$0xff]  }
   0x5   :  { %v153_v18 = vmul.f32 %v428_v10, %v603_v1  ;;  %v154_v19 = vmul.f32 %v429_v11, %v603_v1  ;;  %v155_v22 = vmul.f32 %v432_v14, %v603_v1  ;;  %v156_v23 = vmul.f32 %v433_v15, %v603_v1  ;;  %v553_v0 = vld [vmem:[%s1023_s0 + $0x40] sm:$0xff]  }
   0x6   :  { %v220_v20 = vadd.f32 %v617_v7, %v149_v12  ;;  %v221_v21 = vadd.f32 %v617_v7, %v150_v13  ;;  %v222_v24 = vadd.f32 %v617_v7, %v151_v16  ;;  %v223_v25 = vadd.f32 %v617_v7, %v152_v17  ;;  %v556_v13 = vld [vmem:[%s1023_s0 + $0x58] sm:$0xff]  }
   0x7   :  { %v224_v26 = vadd.f32 %v617_v7, %v153_v18  ;;  %v225_v27 = vadd.f32 %v617_v7, %v154_v19  ;;  %v226_v31 = vadd.f32 %v617_v7, %v155_v22  ;;  %v227_v32 = vadd.f32 %v617_v7, %v156_v23 }
   0x8   :  { %v284_v29 = vmax.f32 %v220_v20, 0.0  ;;  %v285_v30 = vmax.f32 %v221_v21, 0.0  ;;  %v286_v35 = vmax.f32 %v222_v24, 0.0  ;;  %v287_v36 = vmax.f32 %v223_v25, 0.0 }
   0x9   :  { %v288_v37 = vmax.f32 %v224_v26, 0.0  ;;  %v289_v38 = vmax.f32 %v225_v27, 0.0  ;;  %v290_v40 = vmax.f32 %v226_v31, 0.0  ;;  %v291_v41 = vmax.f32 %v227_v32, 0.0 }
   0xa   :  { %348 = vst [vmem:[%s1026_s3] sm:$0xff] %v284_v29  ;;  %349 = vst [vmem:[%s1026_s3 + $0x8] sm:$0xff] %v285_v30  ;;  %v436_v42 = vunpack.c.l.bf16 %v549_v28  ;;  %v437_v43 = vunpack.c.h.bf16 %v549_v28  ;;  %v440_v44 = vunpack.c.l.bf16 %v550_v33  ;;  %v441_v45 = vunpack.c.h.bf16 %v550_v33 }
   0xb   :  { %350 = vst [vmem:[%s1026_s3 + $0x10] sm:$0xff] %v286_v35  ;;  %351 = vst [vmem:[%s1026_s3 + $0x18] sm:$0xff] %v287_v36  ;;  %v444_v46 = vunpack.c.l.bf16 %v551_v34  ;;  %v445_v47 = vunpack.c.h.bf16 %v551_v34  ;;  %v448_v50 = vunpack.c.l.bf16 %v552_v39  ;;  %v449_v51 = vunpack.c.h.bf16 %v552_v39 }
   0xc   :  { %352 = vst [vmem:[%s1026_s3 + $0x20] sm:$0xff] %v288_v37  ;;  %353 = vst [vmem:[%s1026_s3 + $0x28] sm:$0xff] %v289_v38  ;;  %v157_v48 = vmul.f32 %v436_v42, %v603_v1  ;;  %v158_v49 = vmul.f32 %v437_v43, %v603_v1  ;;  %v159_v52 = vmul.f32 %v440_v44, %v603_v1  ;;  %v452_v16 = vunpack.c.l.bf16 %v553_v0  ;;  %v557_v38 = vld [vmem:[%s1023_s0 + $0x60] sm:$0xff]   ;;  %v558_v43 = vld [vmem:[%s1023_s0 + $0x68] sm:$0xff]  }
   0xd   :  { %354 = vst [vmem:[%s1026_s3 + $0x30] sm:$0xff] %v290_v40  ;;  %355 = vst [vmem:[%s1026_s3 + $0x38] sm:$0xff] %v291_v41  ;;  %v160_v53 = vmul.f32 %v441_v45, %v603_v1  ;;  %v161_v54 = vmul.f32 %v444_v46, %v603_v1  ;;  %v162_v55 = vmul.f32 %v445_v47, %v603_v1  ;;  %v453_v17 = vunpack.c.h.bf16 %v553_v0  ;;  %v559_v44 = vld [vmem:[%s1023_s0 + $0x70] sm:$0xff]  }
   0xe   :  { %v228_v56 = vadd.f32 %v617_v7, %v157_v48  ;;  %v229_v57 = vadd.f32 %v617_v7, %v158_v49  ;;  %v163_v58 = vmul.f32 %v448_v50, %v603_v1  ;;  %v164_v59 = vmul.f32 %v449_v51, %v603_v1  ;;  %v560_v49 = vld [vmem:[%s1023_s0 + $0x78] sm:$0xff]  }
   0xf   :  { %v230_v60 = vadd.f32 %v617_v7, %v159_v52  ;;  %v231_v61 = vadd.f32 %v617_v7, %v160_v53  ;;  %v232_v62 = vadd.f32 %v617_v7, %v161_v54  ;;  %v233_v63 = vadd.f32 %v617_v7, %v162_v55 }
  0x10   :  { %v292_v2 = vmax.f32 %v228_v56, 0.0  ;;  %v293_v3 = vmax.f32 %v229_v57, 0.0  ;;  %v234_v4 = vadd.f32 %v617_v7, %v163_v58  ;;  %v235_v5 = vadd.f32 %v617_v7, %v164_v59 }
  0x11   :  { %v294_v9 = vmax.f32 %v230_v60, 0.0  ;;  %v295_v10 = vmax.f32 %v231_v61, 0.0  ;;  %v296_v11 = vmax.f32 %v232_v62, 0.0  ;;  %v297_v12 = vmax.f32 %v233_v63, 0.0 }
  0x12   :  { %356 = vst [vmem:[%s1026_s3 + $0x40] sm:$0xff] %v292_v2  ;;  %357 = vst [vmem:[%s1026_s3 + $0x48] sm:$0xff] %v293_v3  ;;  %v298_v14 = vmax.f32 %v234_v4, 0.0  ;;  %v299_v15 = vmax.f32 %v235_v5, 0.0  ;;  %v456_v18 = vunpack.c.l.bf16 %v554_v6  ;;  %v457_v19 = vunpack.c.h.bf16 %v554_v6 }
  0x13   :  { %358 = vst [vmem:[%s1026_s3 + $0x50] sm:$0xff] %v294_v9  ;;  %359 = vst [vmem:[%s1026_s3 + $0x58] sm:$0xff] %v295_v10  ;;  %v460_v20 = vunpack.c.l.bf16 %v555_v8  ;;  %v461_v21 = vunpack.c.h.bf16 %v555_v8  ;;  %v165_v22 = vmul.f32 %v452_v16, %v603_v1  ;;  %v166_v23 = vmul.f32 %v453_v17, %v603_v1  ;;  %v562_v17 = vld [vmem:[%s1023_s0 + $0x88] sm:$0xff]  }
  0x14   :  { %360 = vst [vmem:[%s1026_s3 + $0x60] sm:$0xff] %v296_v11  ;;  %361 = vst [vmem:[%s1026_s3 + $0x68] sm:$0xff] %v297_v12  ;;  %v464_v24 = vunpack.c.l.bf16 %v556_v13  ;;  %v465_v25 = vunpack.c.h.bf16 %v556_v13  ;;  %v167_v26 = vmul.f32 %v456_v18, %v603_v1  ;;  %v168_v27 = vmul.f32 %v457_v19, %v603_v1  ;;  %v561_v12 = vld [vmem:[%s1023_s0 + $0x80] sm:$0xff]   ;;  %v563_v18 = vld [vmem:[%s1023_s0 + $0x90] sm:$0xff]  }
  0x15   :  { %362 = vst [vmem:[%s1026_s3 + $0x70] sm:$0xff] %v298_v14  ;;  %363 = vst [vmem:[%s1026_s3 + $0x78] sm:$0xff] %v299_v15  ;;  %v169_v28 = vmul.f32 %v460_v20, %v603_v1  ;;  %v170_v29 = vmul.f32 %v461_v21, %v603_v1  ;;  %v236_v30 = vadd.f32 %v617_v7, %v165_v22  ;;  %v468_v52 = vunpack.c.l.bf16 %v557_v38 }
  0x16   :  { %v237_v31 = vadd.f32 %v617_v7, %v166_v23  ;;  %v171_v32 = vmul.f32 %v464_v24, %v603_v1  ;;  %v172_v33 = vmul.f32 %v465_v25, %v603_v1  ;;  %v238_v34 = vadd.f32 %v617_v7, %v167_v26  ;;  %v564_v23 = vld [vmem:[%s1023_s0 + $0x98] sm:$0xff]  }
  0x17   :  { %v239_v35 = vadd.f32 %v617_v7, %v168_v27  ;;  %v240_v36 = vadd.f32 %v617_v7, %v169_v28  ;;  %v241_v37 = vadd.f32 %v617_v7, %v170_v29  ;;  %v300_v39 = vmax.f32 %v236_v30, 0.0 }
  0x18   :  { %v301_v40 = vmax.f32 %v237_v31, 0.0  ;;  %v242_v41 = vadd.f32 %v617_v7, %v171_v32  ;;  %v243_v42 = vadd.f32 %v617_v7, %v172_v33  ;;  %v302_v45 = vmax.f32 %v238_v34, 0.0 }
  0x19   :  { %v303_v46 = vmax.f32 %v239_v35, 0.0  ;;  %v304_v47 = vmax.f32 %v240_v36, 0.0  ;;  %v305_v48 = vmax.f32 %v241_v37, 0.0  ;;  %364 = vst [vmem:[%s1026_s3 + $0x80] sm:$0xff] %v300_v39  ;;  %v469_v53 = vunpack.c.h.bf16 %v557_v38 }
  0x1a   :  { %365 = vst [vmem:[%s1026_s3 + $0x88] sm:$0xff] %v301_v40  ;;  %v306_v50 = vmax.f32 %v242_v41, 0.0  ;;  %v307_v51 = vmax.f32 %v243_v42, 0.0  ;;  %366 = vst [vmem:[%s1026_s3 + $0x90] sm:$0xff] %v302_v45  ;;  %v472_v54 = vunpack.c.l.bf16 %v558_v43  ;;  %v473_v55 = vunpack.c.h.bf16 %v558_v43 }
  0x1b   :  { %367 = vst [vmem:[%s1026_s3 + $0x98] sm:$0xff] %v303_v46  ;;  %368 = vst [vmem:[%s1026_s3 + $0xa0] sm:$0xff] %v304_v47  ;;  %v476_v56 = vunpack.c.l.bf16 %v559_v44  ;;  %v477_v57 = vunpack.c.h.bf16 %v559_v44  ;;  %v173_v58 = vmul.f32 %v468_v52, %v603_v1  ;;  %v174_v59 = vmul.f32 %v469_v53, %v603_v1  ;;  %v566_v53 = vld [vmem:[%s1023_s0 + $0xa8] sm:$0xff]  }
  0x1c   :  { %369 = vst [vmem:[%s1026_s3 + $0xa8] sm:$0xff] %v305_v48  ;;  %370 = vst [vmem:[%s1026_s3 + $0xb0] sm:$0xff] %v306_v50  ;;  %v480_v60 = vunpack.c.l.bf16 %v560_v49  ;;  %v481_v61 = vunpack.c.h.bf16 %v560_v49  ;;  %v175_v62 = vmul.f32 %v472_v54, %v603_v1  ;;  %v176_v63 = vmul.f32 %v473_v55, %v603_v1  ;;  %v565_v48 = vld [vmem:[%s1023_s0 + $0xa0] sm:$0xff]   ;;  %v567_v54 = vld [vmem:[%s1023_s0 + $0xb0] sm:$0xff]  }
  0x1d   :  { %371 = vst [vmem:[%s1026_s3 + $0xb8] sm:$0xff] %v307_v51  ;;  %v177_v0 = vmul.f32 %v476_v56, %v603_v1  ;;  %v178_v2 = vmul.f32 %v477_v57, %v603_v1  ;;  %v244_v3 = vadd.f32 %v617_v7, %v173_v58  ;;  %v245_v4 = vadd.f32 %v617_v7, %v174_v59  ;;  %v568_v59 = vld [vmem:[%s1023_s0 + $0xb8] sm:$0xff]  }
  0x1e   :  { %v179_v5 = vmul.f32 %v480_v60, %v603_v1  ;;  %v180_v6 = vmul.f32 %v481_v61, %v603_v1  ;;  %v246_v8 = vadd.f32 %v617_v7, %v175_v62  ;;  %v247_v9 = vadd.f32 %v617_v7, %v176_v63 }
  0x1f   :  { %v248_v10 = vadd.f32 %v617_v7, %v177_v0  ;;  %v249_v11 = vadd.f32 %v617_v7, %v178_v2  ;;  %v308_v13 = vmax.f32 %v244_v3, 0.0  ;;  %v309_v14 = vmax.f32 %v245_v4, 0.0 }
  0x20   :  { %v250_v15 = vadd.f32 %v617_v7, %v179_v5  ;;  %v251_v16 = vadd.f32 %v617_v7, %v180_v6  ;;  %v310_v19 = vmax.f32 %v246_v8, 0.0  ;;  %v311_v20 = vmax.f32 %v247_v9, 0.0 }
  0x21   :  { %v312_v21 = vmax.f32 %v248_v10, 0.0  ;;  %v313_v22 = vmax.f32 %v249_v11, 0.0  ;;  %372 = vst [vmem:[%s1026_s3 + $0xc0] sm:$0xff] %v308_v13  ;;  %373 = vst [vmem:[%s1026_s3 + $0xc8] sm:$0xff] %v309_v14  ;;  %v484_v26 = vunpack.c.l.bf16 %v561_v12  ;;  %v485_v27 = vunpack.c.h.bf16 %v561_v12 }
  0x22   :  { %v314_v24 = vmax.f32 %v250_v15, 0.0  ;;  %v315_v25 = vmax.f32 %v251_v16, 0.0  ;;  %374 = vst [vmem:[%s1026_s3 + $0xd0] sm:$0xff] %v310_v19  ;;  %375 = vst [vmem:[%s1026_s3 + $0xd8] sm:$0xff] %v311_v20  ;;  %v488_v28 = vunpack.c.l.bf16 %v562_v17  ;;  %v489_v29 = vunpack.c.h.bf16 %v562_v17 }
  0x23   :  { %376 = vst [vmem:[%s1026_s3 + $0xe0] sm:$0xff] %v312_v21  ;;  %377 = vst [vmem:[%s1026_s3 + $0xe8] sm:$0xff] %v313_v22  ;;  %v492_v30 = vunpack.c.l.bf16 %v563_v18  ;;  %v493_v31 = vunpack.c.h.bf16 %v563_v18  ;;  %v181_v32 = vmul.f32 %v484_v26, %v603_v1  ;;  %v182_v33 = vmul.f32 %v485_v27, %v603_v1  ;;  %v569_v22 = vld [vmem:[%s1023_s0 + $0xc0] sm:$0xff]   ;;  %v570_v27 = vld [vmem:[%s1023_s0 + $0xc8] sm:$0xff]  }
  0x24   :  { %378 = vst [vmem:[%s1026_s3 + $0xf0] sm:$0xff] %v314_v24  ;;  %379 = vst [vmem:[%s1026_s3 + $0xf8] sm:$0xff] %v315_v25  ;;  %v496_v34 = vunpack.c.l.bf16 %v564_v23  ;;  %v497_v35 = vunpack.c.h.bf16 %v564_v23  ;;  %v183_v36 = vmul.f32 %v488_v28, %v603_v1  ;;  %v184_v37 = vmul.f32 %v489_v29, %v603_v1  ;;  %v571_v28 = vld [vmem:[%s1023_s0 + $0xd0] sm:$0xff]  }
  0x25   :  { %v185_v38 = vmul.f32 %v492_v30, %v603_v1  ;;  %v186_v39 = vmul.f32 %v493_v31, %v603_v1  ;;  %v252_v40 = vadd.f32 %v617_v7, %v181_v32  ;;  %v253_v41 = vadd.f32 %v617_v7, %v182_v33  ;;  %v572_v33 = vld [vmem:[%s1023_s0 + $0xd8] sm:$0xff]  }
  0x26   :  { %v187_v42 = vmul.f32 %v496_v34, %v603_v1  ;;  %v188_v43 = vmul.f32 %v497_v35, %v603_v1  ;;  %v254_v44 = vadd.f32 %v617_v7, %v183_v36  ;;  %v255_v45 = vadd.f32 %v617_v7, %v184_v37 }
  0x27   :  { %v256_v46 = vadd.f32 %v617_v7, %v185_v38  ;;  %v257_v47 = vadd.f32 %v617_v7, %v186_v39  ;;  %v316_v49 = vmax.f32 %v252_v40, 0.0  ;;  %v317_v50 = vmax.f32 %v253_v41, 0.0 }
  0x28   :  { %v258_v51 = vadd.f32 %v617_v7, %v187_v42  ;;  %v259_v52 = vadd.f32 %v617_v7, %v188_v43  ;;  %v318_v55 = vmax.f32 %v254_v44, 0.0  ;;  %v319_v56 = vmax.f32 %v255_v45, 0.0 }
  0x29   :  { %v320_v57 = vmax.f32 %v256_v46, 0.0  ;;  %v321_v58 = vmax.f32 %v257_v47, 0.0  ;;  %380 = vst [vmem:[%s1026_s3 + $0x100] sm:$0xff] %v316_v49  ;;  %381 = vst [vmem:[%s1026_s3 + $0x108] sm:$0xff] %v317_v50  ;;  %v500_v62 = vunpack.c.l.bf16 %v565_v48  ;;  %v501_v63 = vunpack.c.h.bf16 %v565_v48 }
  0x2a   :  { %v322_v60 = vmax.f32 %v258_v51, 0.0  ;;  %v323_v61 = vmax.f32 %v259_v52, 0.0  ;;  %382 = vst [vmem:[%s1026_s3 + $0x110] sm:$0xff] %v318_v55  ;;  %383 = vst [vmem:[%s1026_s3 + $0x118] sm:$0xff] %v319_v56  ;;  %v504_v0 = vunpack.c.l.bf16 %v566_v53  ;;  %v505_v2 = vunpack.c.h.bf16 %v566_v53 }
  0x2b   :  { %384 = vst [vmem:[%s1026_s3 + $0x120] sm:$0xff] %v320_v57  ;;  %385 = vst [vmem:[%s1026_s3 + $0x128] sm:$0xff] %v321_v58  ;;  %v508_v3 = vunpack.c.l.bf16 %v567_v54  ;;  %v509_v4 = vunpack.c.h.bf16 %v567_v54  ;;  %v189_v5 = vmul.f32 %v500_v62, %v603_v1  ;;  %v190_v6 = vmul.f32 %v501_v63, %v603_v1  ;;  %v573_v58 = vld [vmem:[%s1023_s0 + $0xe0] sm:$0xff]   ;;  %v574_v63 = vld [vmem:[%s1023_s0 + $0xe8] sm:$0xff]  }
  0x2c   :  { %386 = vst [vmem:[%s1026_s3 + $0x130] sm:$0xff] %v322_v60  ;;  %387 = vst [vmem:[%s1026_s3 + $0x138] sm:$0xff] %v323_v61  ;;  %v512_v8 = vunpack.c.l.bf16 %v568_v59  ;;  %v513_v9 = vunpack.c.h.bf16 %v568_v59  ;;  %v191_v10 = vmul.f32 %v504_v0, %v603_v1  ;;  %v192_v11 = vmul.f32 %v505_v2, %v603_v1  ;;  %v575_v0 = vld [vmem:[%s1023_s0 + $0xf0] sm:$0xff]  }
  0x2d   :  { %v193_v12 = vmul.f32 %v508_v3, %v603_v1  ;;  %v194_v13 = vmul.f32 %v509_v4, %v603_v1  ;;  %v260_v14 = vadd.f32 %v617_v7, %v189_v5  ;;  %v261_v15 = vadd.f32 %v617_v7, %v190_v6  ;;  %v576_v6 = vld [vmem:[%s1023_s0 + $0xf8] sm:$0xff]  }
  0x2e   :  { %v195_v16 = vmul.f32 %v512_v8, %v603_v1  ;;  %v196_v17 = vmul.f32 %v513_v9, %v603_v1  ;;  %v262_v18 = vadd.f32 %v617_v7, %v191_v10  ;;  %v263_v19 = vadd.f32 %v617_v7, %v192_v11 }
  0x2f   :  { %v264_v20 = vadd.f32 %v617_v7, %v193_v12  ;;  %v265_v21 = vadd.f32 %v617_v7, %v194_v13  ;;  %v324_v23 = vmax.f32 %v260_v14, 0.0  ;;  %v325_v24 = vmax.f32 %v261_v15, 0.0 }
  0x30   :  { %v266_v25 = vadd.f32 %v617_v7, %v195_v16  ;;  %v267_v26 = vadd.f32 %v617_v7, %v196_v17  ;;  %v326_v29 = vmax.f32 %v262_v18, 0.0  ;;  %v327_v30 = vmax.f32 %v263_v19, 0.0 }
  0x31   :  { %v328_v31 = vmax.f32 %v264_v20, 0.0  ;;  %v329_v32 = vmax.f32 %v265_v21, 0.0  ;;  %388 = vst [vmem:[%s1026_s3 + $0x140] sm:$0xff] %v324_v23  ;;  %389 = vst [vmem:[%s1026_s3 + $0x148] sm:$0xff] %v325_v24  ;;  %v516_v36 = vunpack.c.l.bf16 %v569_v22  ;;  %v517_v37 = vunpack.c.h.bf16 %v569_v22 }
  0x32   :  { %v330_v34 = vmax.f32 %v266_v25, 0.0  ;;  %v331_v35 = vmax.f32 %v267_v26, 0.0  ;;  %390 = vst [vmem:[%s1026_s3 + $0x150] sm:$0xff] %v326_v29  ;;  %391 = vst [vmem:[%s1026_s3 + $0x158] sm:$0xff] %v327_v30  ;;  %v520_v38 = vunpack.c.l.bf16 %v570_v27  ;;  %v521_v39 = vunpack.c.h.bf16 %v570_v27 }
  0x33   :  { %392 = vst [vmem:[%s1026_s3 + $0x160] sm:$0xff] %v328_v31  ;;  %393 = vst [vmem:[%s1026_s3 + $0x168] sm:$0xff] %v329_v32  ;;  %v524_v40 = vunpack.c.l.bf16 %v571_v28  ;;  %v525_v41 = vunpack.c.h.bf16 %v571_v28  ;;  %v197_v42 = vmul.f32 %v516_v36, %v603_v1  ;;  %v198_v43 = vmul.f32 %v517_v37, %v603_v1 }
  0x34   :  { %394 = vst [vmem:[%s1026_s3 + $0x170] sm:$0xff] %v330_v34  ;;  %395 = vst [vmem:[%s1026_s3 + $0x178] sm:$0xff] %v331_v35  ;;  %v528_v44 = vunpack.c.l.bf16 %v572_v33  ;;  %v529_v45 = vunpack.c.h.bf16 %v572_v33  ;;  %v199_v46 = vmul.f32 %v520_v38, %v603_v1  ;;  %v200_v47 = vmul.f32 %v521_v39, %v603_v1 }
  0x35   :  { %v201_v48 = vmul.f32 %v524_v40, %v603_v1  ;;  %v202_v49 = vmul.f32 %v525_v41, %v603_v1  ;;  %v268_v50 = vadd.f32 %v617_v7, %v197_v42  ;;  %v269_v51 = vadd.f32 %v617_v7, %v198_v43 }
  0x36   :  { %v203_v52 = vmul.f32 %v528_v44, %v603_v1  ;;  %v204_v53 = vmul.f32 %v529_v45, %v603_v1  ;;  %v270_v54 = vadd.f32 %v617_v7, %v199_v46  ;;  %v271_v55 = vadd.f32 %v617_v7, %v200_v47 }
  0x37   :  { %v272_v56 = vadd.f32 %v617_v7, %v201_v48  ;;  %v273_v57 = vadd.f32 %v617_v7, %v202_v49  ;;  %v332_v59 = vmax.f32 %v268_v50, 0.0  ;;  %v333_v60 = vmax.f32 %v269_v51, 0.0 }
  0x38   :  { %v274_v61 = vadd.f32 %v617_v7, %v203_v52  ;;  %v275_v62 = vadd.f32 %v617_v7, %v204_v53  ;;  %v334_v2 = vmax.f32 %v270_v54, 0.0  ;;  %v335_v3 = vmax.f32 %v271_v55, 0.0 }
  0x39   :  { %v336_v4 = vmax.f32 %v272_v56, 0.0  ;;  %v337_v5 = vmax.f32 %v273_v57, 0.0  ;;  %396 = vst [vmem:[%s1026_s3 + $0x180] sm:$0xff] %v332_v59  ;;  %397 = vst [vmem:[%s1026_s3 + $0x188] sm:$0xff] %v333_v60  ;;  %v532_v10 = vunpack.c.l.bf16 %v573_v58  ;;  %v533_v11 = vunpack.c.h.bf16 %v573_v58 }
  0x3a   :  { %v338_v8 = vmax.f32 %v274_v61, 0.0  ;;  %v339_v9 = vmax.f32 %v275_v62, 0.0  ;;  %398 = vst [vmem:[%s1026_s3 + $0x190] sm:$0xff] %v334_v2  ;;  %399 = vst [vmem:[%s1026_s3 + $0x198] sm:$0xff] %v335_v3  ;;  %v536_v12 = vunpack.c.l.bf16 %v574_v63  ;;  %v537_v13 = vunpack.c.h.bf16 %v574_v63 }
  0x3b   :  { %400 = vst [vmem:[%s1026_s3 + $0x1a0] sm:$0xff] %v336_v4  ;;  %401 = vst [vmem:[%s1026_s3 + $0x1a8] sm:$0xff] %v337_v5  ;;  %v540_v14 = vunpack.c.l.bf16 %v575_v0  ;;  %v541_v15 = vunpack.c.h.bf16 %v575_v0  ;;  %v205_v16 = vmul.f32 %v532_v10, %v603_v1  ;;  %v206_v17 = vmul.f32 %v533_v11, %v603_v1 }
  0x3c   :  { %402 = vst [vmem:[%s1026_s3 + $0x1b0] sm:$0xff] %v338_v8  ;;  %403 = vst [vmem:[%s1026_s3 + $0x1b8] sm:$0xff] %v339_v9  ;;  %v544_v18 = vunpack.c.l.bf16 %v576_v6  ;;  %v545_v19 = vunpack.c.h.bf16 %v576_v6  ;;  %v207_v20 = vmul.f32 %v536_v12, %v603_v1  ;;  %v208_v21 = vmul.f32 %v537_v13, %v603_v1 }
  0x3d   :  { %v209_v22 = vmul.f32 %v540_v14, %v603_v1  ;;  %v210_v23 = vmul.f32 %v541_v15, %v603_v1  ;;  %v276_v24 = vadd.f32 %v617_v7, %v205_v16  ;;  %v277_v25 = vadd.f32 %v617_v7, %v206_v17 }
  0x3e   :  { %v211_v26 = vmul.f32 %v544_v18, %v603_v1  ;;  %v212_v27 = vmul.f32 %v545_v19, %v603_v1  ;;  %v278_v28 = vadd.f32 %v617_v7, %v207_v20  ;;  %v279_v29 = vadd.f32 %v617_v7, %v208_v21 }
  0x3f   :  { %v280_v30 = vadd.f32 %v617_v7, %v209_v22  ;;  %v281_v31 = vadd.f32 %v617_v7, %v210_v23  ;;  %v340_v32 = vmax.f32 %v276_v24, 0.0  ;;  %v341_v33 = vmax.f32 %v277_v25, 0.0 }
  0x40   :  { %v282_v34 = vadd.f32 %v617_v7, %v211_v26  ;;  %v283_v35 = vadd.f32 %v617_v7, %v212_v27  ;;  %v342_v36 = vmax.f32 %v278_v28, 0.0  ;;  %v343_v37 = vmax.f32 %v279_v29, 0.0 }
  0x41   :  { %v344_v38 = vmax.f32 %v280_v30, 0.0  ;;  %v345_v39 = vmax.f32 %v281_v31, 0.0  ;;  %404 = vst [vmem:[%s1026_s3 + $0x1c0] sm:$0xff] %v340_v32  ;;  %405 = vst [vmem:[%s1026_s3 + $0x1c8] sm:$0xff] %v341_v33 }
  0x42   :  { %v346_v1 = vmax.f32 %v282_v34, 0.0  ;;  %v347_v40 = vmax.f32 %v283_v35, 0.0  ;;  %406 = vst [vmem:[%s1026_s3 + $0x1d0] sm:$0xff] %v342_v36  ;;  %407 = vst [vmem:[%s1026_s3 + $0x1d8] sm:$0xff] %v343_v37 }
  0x43   :  { %408 = vst [vmem:[%s1026_s3 + $0x1e0] sm:$0xff] %v344_v38  ;;  %409 = vst [vmem:[%s1026_s3 + $0x1e8] sm:$0xff] %v345_v39 }
  0x44   :  { %410 = vst [vmem:[%s1026_s3 + $0x1f0] sm:$0xff] %v346_v1  ;;  %411 = vst [vmem:[%s1026_s3 + $0x1f8] sm:$0xff] %v347_v40 }

// kernel: up_conv_forward.2
= control target key start
LH: loop header
LB: loop body
LE: loop exit
PB: predicated region body
PF: predicated region fallthrough
CT: control target
= control target key end

     0   :  { %vm365_vm0 = vcmask 1041408   ;;  %vm268_vm1 = vcmask 293888   ;;  %v1727_v39 = vmov 0.0   ;;  %s2256_s1 = inlined_call_operand.vmem [shape: bf16[36,128], index: 1, kind: input, shape index: {}]   ;;  %s2257_s0 = inlined_call_operand.vmem [shape: bf16[512,36], index: 0, kind: input, shape index: {}]   ;;  %s2258_s2 = inlined_call_operand.vmem [shape: f32[1,128], index: 2, kind: input, shape index: {}]   ;;  %s2259_s4 = inlined_call_operand.vmem [shape: f32[8,128], index: 4, kind: output, shape index: {1}]   ;;  %s2260_s3 = inlined_call_operand.vmem [shape: bf16[512,128], index: 3, kind: output, shape index: {0}]  }
   0x1   :  { %v1692_v0 = vld [vmem:[%s2256_s1 + $0x10] ss:$0 sps:$4 sm:$0x33]   ;;  %v1693_v1 = vld [vmem:[%s2256_s1 + $0x8] sm:$0xff]   ;;  %v1695_v3 = vld [vmem:[%s2257_s0] sm:$0xff]   ;;  %978 = vst [vmem:[%s2259_s4] sm:$0xff] %v1727_v39 }
   0x2   :  { %1689 = vmatprep.subr.msk.bf16.mxu0 %vm365_vm0, %v1692_v0  ;;  %v367_v2 = vsel %vm365_vm0, %v1692_v0, 0  ;;  %1690 = vmatprep.subr.msk.bf16.mxu1 %vm365_vm0, %v1692_v0  ;;  %v1694_v4 = vld [vmem:[%s2256_s1] sm:$0xff]   ;;  %v1696_v5 = vld [vmem:[%s2257_s0 + $0x8] sm:$0xff]   ;;  %v1697_v6 = vld [vmem:[%s2257_s0 + $0x10] sm:$0xff]  }
   0x3   :  { %1614 = vmatpush3.bf16.msra.mxu0 %v367_v2  ;;  %1686 = vmatpush3.bf16.msra.mxu1 %v367_v2  ;;  %v1698_v7 = vld [vmem:[%s2257_s0 + $0x18] sm:$0xff]   ;;  %v1699_v8 = vld [vmem:[%s2257_s0 + $0x20] sm:$0xff]   ;;  %v1712_v10 = vld [vmem:[%s2257_s0 + $0x88] sm:$0xff]  }
   0x4   :  { %1615 = vmatprep.subr.bf16.mxu0 %v1693_v1  ;;  %1684 = vmatprep.subr.bf16.mxu1 %v1693_v1  ;;  %v1711_v9 = vld [vmem:[%s2257_s0 + $0x80] sm:$0xff]   ;;  %v1713_v11 = vld [vmem:[%s2257_s0 + $0x90] sm:$0xff]   ;;  %v1700_v12 = vld [vmem:[%s2257_s0 + $0x28] sm:$0xff]  }
   0x5   :  { %1619 = vmatprep.mubr.msk.bf16.mxu0 %vm268_vm1, %v1695_v3  ;;  %1651 = vmatprep.mubr.msk.bf16.mxu1 %vm268_vm1, %v1711_v9  ;;  %v1701_v13 = vld [vmem:[%s2257_s0 + $0x30] sm:$0xff]   ;;  %v1714_v14 = vld [vmem:[%s2257_s0 + $0x98] sm:$0xff]   ;;  %v1715_v15 = vld [vmem:[%s2257_s0 + $0xa0] sm:$0xff]  }
   0x6   :  { %v1702_v16 = vld [vmem:[%s2257_s0 + $0x38] sm:$0xff]   ;;  %v1716_v17 = vld [vmem:[%s2257_s0 + $0xa8] sm:$0xff]   ;;  %v1703_v18 = vld [vmem:[%s2257_s0 + $0x40] sm:$0xff]  }
   0x7   :  { %1616 = vmatpush3.bf16.msra.mxu0 %v1693_v1  ;;  %1687 = vmatpush3.bf16.msra.mxu1 %v1693_v1  ;;  %v1717_v19 = vld [vmem:[%s2257_s0 + $0xb0] sm:$0xff]   ;;  %v1704_v20 = vld [vmem:[%s2257_s0 + $0x48] sm:$0xff]   ;;  %v1718_v21 = vld [vmem:[%s2257_s0 + $0xb8] sm:$0xff]  }
   0x8   :  { %1617 = vmatprep.subr.bf16.mxu0 %v1694_v4  ;;  %1685 = vmatprep.subr.bf16.mxu1 %v1694_v4  ;;  %v1705_v22 = vld [vmem:[%s2257_s0 + $0x50] sm:$0xff]   ;;  %v1719_v23 = vld [vmem:[%s2257_s0 + $0xc0] sm:$0xff]   ;;  %v1706_v24 = vld [vmem:[%s2257_s0 + $0x58] sm:$0xff]  }
   0x9   :  { %v1720_v25 = vld [vmem:[%s2257_s0 + $0xc8] sm:$0xff]   ;;  %v1707_v26 = vld [vmem:[%s2257_s0 + $0x60] sm:$0xff]   ;;  %v1721_v27 = vld [vmem:[%s2257_s0 + $0xd0] sm:$0xff]  }
   0xa   :  { %v1708_v28 = vld [vmem:[%s2257_s0 + $0x68] sm:$0xff]   ;;  %v1722_v29 = vld [vmem:[%s2257_s0 + $0xd8] sm:$0xff]   ;;  %v1709_v30 = vld [vmem:[%s2257_s0 + $0x70] sm:$0xff]  }
   0xb   :  { %1618 = vmatpush3.bf16.msra.mxu0 %v1694_v4  ;;  %1688 = vmatpush3.bf16.msra.mxu1 %v1694_v4  ;;  %v1723_v31 = vld [vmem:[%s2257_s0 + $0xe0] sm:$0xff]   ;;  %v1710_v32 = vld [vmem:[%s2257_s0 + $0x78] sm:$0xff]   ;;  %v1724_v33 = vld [vmem:[%s2257_s0 + $0xe8] sm:$0xff]  }
   0xc   :  { %v1725_v34 = vld [vmem:[%s2257_s0 + $0xf0] sm:$0xff]   ;;  %v1726_v35 = vld [vmem:[%s2257_s0 + $0xf8] sm:$0xff]   ;;  %v1893_v37 = vld [vmem:[%s2258_s2] ss:$0 sm:$0xff] }
   0xe   :  { %1620 = vmatmul.mubr.msk.bf16.vlgmr.msra.gmra.mxu0 %vm268_vm1, %v1696_v5  ;;  %1652 = vmatmul.mubr.msk.bf16.vlgmr.msra.gmra.mxu1 %vm268_vm1, %v1712_v10 }
   0xf   :  { %1623 = vmatprep.mubr.msk.bf16.mxu0 %vm268_vm1, %v1697_v6  ;;  %1655 = vmatprep.mubr.msk.bf16.mxu1 %vm268_vm1, %v1713_v11 }
  0x16   :  { %1624 = vmatmul.mubr.msk.bf16.gmra.mxu0 %vm268_vm1, %v1698_v7  ;;  %1656 = vmatmul.mubr.msk.bf16.gmra.mxu1 %vm268_vm1, %v1714_v14 }
  0x17   :  { %1627 = vmatprep.mubr.msk.bf16.mxu0 %vm268_vm1, %v1699_v8  ;;  %1659 = vmatprep.mubr.msk.bf16.mxu1 %vm268_vm1, %v1715_v15 }
  0x1e   :  { %1628 = vmatmul.mubr.msk.bf16.gmra.mxu0 %vm268_vm1, %v1700_v12  ;;  %1660 = vmatmul.mubr.msk.bf16.gmra.mxu1 %vm268_vm1, %v1716_v17 }
  0x1f   :  { %1631 = vmatprep.mubr.msk.bf16.mxu0 %vm268_vm1, %v1701_v13  ;;  %1663 = vmatprep.mubr.msk.bf16.mxu1 %vm268_vm1, %v1717_v19 }
  0x26   :  { %1632 = vmatmul.mubr.msk.bf16.gmra.mxu0 %vm268_vm1, %v1702_v16  ;;  %1664 = vmatmul.mubr.msk.bf16.gmra.mxu1 %vm268_vm1, %v1718_v21 }
  0x27   :  { %1635 = vmatprep.mubr.msk.bf16.mxu0 %vm268_vm1, %v1703_v18  ;;  %1667 = vmatprep.mubr.msk.bf16.mxu1 %vm268_vm1, %v1719_v23 }
  0x2e   :  { %1636 = vmatmul.mubr.msk.bf16.gmra.mxu0 %vm268_vm1, %v1704_v20  ;;  %1668 = vmatmul.mubr.msk.bf16.gmra.mxu1 %vm268_vm1, %v1720_v25 }
  0x2f   :  { %1639 = vmatprep.mubr.msk.bf16.mxu0 %vm268_vm1, %v1705_v22  ;;  %1671 = vmatprep.mubr.msk.bf16.mxu1 %vm268_vm1, %v1721_v27 }
  0x36   :  { %1640 = vmatmul.mubr.msk.bf16.gmra.mxu0 %vm268_vm1, %v1706_v24  ;;  %1672 = vmatmul.mubr.msk.bf16.gmra.mxu1 %vm268_vm1, %v1722_v29 }
  0x37   :  { %1643 = vmatprep.mubr.msk.bf16.mxu0 %vm268_vm1, %v1707_v26  ;;  %1675 = vmatprep.mubr.msk.bf16.mxu1 %vm268_vm1, %v1723_v31 }
  0x3e   :  { %1644 = vmatmul.mubr.msk.bf16.gmra.mxu0 %vm268_vm1, %v1708_v28  ;;  %1676 = vmatmul.mubr.msk.bf16.gmra.mxu1 %vm268_vm1, %v1724_v33 }
  0x3f   :  { %1647 = vmatprep.mubr.msk.bf16.mxu0 %vm268_vm1, %v1709_v30  ;;  %1679 = vmatprep.mubr.msk.bf16.mxu1 %vm268_vm1, %v1725_v34 }
  0x46   :  { %1648 = vmatmul.mubr.msk.bf16.gmra.mxu0 %vm268_vm1, %v1710_v32  ;;  %1680 = vmatmul.mubr.msk.bf16.gmra.mxu1 %vm268_vm1, %v1726_v35 }
  0xce   :  { %v1621_v36 = vpop.f32.mrf.mxu0  ;;  %v1653_v48 = vpop.f32.mrf.mxu1 }
  0xcf   :  { %v412_v41 = vadd.f32 %v1621_v36, %v1893_v37  ;;  %v1910_v61 = vadd.f32 %v1653_v48, %v1893_v37 }
  0xd0   :  { %v403_v38 = vpop.f32.mrf.mxu0  ;;  %v531_v54 = vpop.f32.mrf.mxu1 }
  0xd1   :  { %v404_v42 = vadd.f32 %v1893_v37, %v403_v38  ;;  %v1051_v55 = vmul.f32 %v412_v41, %v412_v41  ;;  %v1915_v4 = vadd.f32 %v1893_v37, %v531_v54 }
  0xd2   :  { %v1622_v40 = vpop.f32.mrf.mxu0  ;;  %v1654_v62 = vpop.f32.mrf.mxu1 }
  0xd3   :  { %v415_v43 = vadd.f32 %v1622_v40, %v1893_v37  ;;  %v1049_v49 = vmul.f32 %v404_v42, %v404_v42  ;;  %v1918_v5 = vadd.f32 %v1654_v62, %v1893_v37 }
  0xd4   :  { %v406_v44 = vpop.f32.mrf.mxu0  ;;  %v534_v6 = vpop.f32.mrf.mxu1 }
  0xd5   :  { %v1395_v45 = vpack.c.bf16 %v415_v43, %v412_v41  ;;  %v407_v46 = vadd.f32 %v1893_v37, %v406_v44  ;;  %v1052_v59 = vmul.f32 %v415_v43, %v415_v43  ;;  %v1475_v13 = vpack.c.bf16 %v1918_v5, %v1910_v61 }
  0xd6   :  { %v1625_v47 = vpop.f32.mrf.mxu0  ;;  %v1924_v14 = vadd.f32 %v1893_v37, %v534_v6  ;;  %v1657_v15 = vpop.f32.mrf.mxu1 }
  0xd7   :  { %1547 = vst [vmem:[%s2260_s3 + $0x8] sm:$0xff] %v1395_v45   ;;  %v1390_v50 = vpack.c.bf16 %v407_v46, %v404_v42  ;;  %v979_v51 = vadd.f32 %v407_v46, %v404_v42  ;;  %v1050_v52 = vmul.f32 %v407_v46, %v407_v46  ;;  %v428_v0 = vadd.f32 %v1625_v47, %v1893_v37 }
  0xd8   :  { %v419_v53 = vpop.f32.mrf.mxu0  ;;  %1563 = vst [vmem:[%s2260_s3 + $0x88] sm:$0xff] %v1475_v13   ;;  %v1470_v21 = vpack.c.bf16 %v1924_v14, %v1915_v4  ;;  %v547_v22 = vpop.f32.mrf.mxu1  ;;  %v1935_v23 = vadd.f32 %v1657_v15, %v1893_v37 }
  0xd9   :  { %1391 = vst [vmem:[%s2260_s3] sm:$0xff] %v1390_v50   ;;  %v980_v56 = vadd.f32 %v979_v51, %v412_v41  ;;  %v1113_v57 = vadd.f32 %v1050_v52, %v1049_v49  ;;  %v420_v58 = vadd.f32 %v1893_v37, %v419_v53  ;;  %v1055_v24 = vmul.f32 %v428_v0, %v428_v0 }
  0xda   :  { %v1626_v60 = vpop.f32.mrf.mxu0  ;;  %1562 = vst [vmem:[%s2260_s3 + $0x80] sm:$0xff] %v1470_v21   ;;  %v1658_v29 = vpop.f32.mrf.mxu1  ;;  %v1950_v38 = vadd.f32 %v1893_v37, %v547_v22 }
  0xdb   :  { %v1114_v63 = vadd.f32 %v1113_v57, %v1051_v55  ;;  %v981_v1 = vadd.f32 %v980_v56, %v415_v43  ;;  %v431_v2 = vadd.f32 %v1626_v60, %v1893_v37  ;;  %v1053_v8 = vmul.f32 %v420_v58, %v420_v58 }
  0xdc   :  { %v422_v3 = vpop.f32.mrf.mxu0  ;;  %v1947_v32 = vadd.f32 %v1658_v29, %v1893_v37  ;;  %v550_v39 = vpop.f32.mrf.mxu1 }
  0xdd   :  { %v982_v7 = vadd.f32 %v981_v1, %v420_v58  ;;  %v1115_v9 = vadd.f32 %v1114_v63, %v1052_v59  ;;  %v1405_v10 = vpack.c.bf16 %v431_v2, %v428_v0  ;;  %v423_v11 = vadd.f32 %v1893_v37, %v422_v3 }
  0xde   :  { %v1629_v12 = vpop.f32.mrf.mxu0  ;;  %v1056_v33 = vmul.f32 %v431_v2, %v431_v2  ;;  %v1485_v42 = vpack.c.bf16 %v1947_v32, %v1935_v23  ;;  %v1956_v47 = vadd.f32 %v1893_v37, %v550_v39  ;;  %v1661_v48 = vpop.f32.mrf.mxu1 }
  0xdf   :  { %v1116_v16 = vadd.f32 %v1115_v9, %v1053_v8  ;;  %1549 = vst [vmem:[%s2260_s3 + $0x18] sm:$0xff] %v1405_v10   ;;  %v1400_v17 = vpack.c.bf16 %v423_v11, %v420_v58  ;;  %v983_v18 = vadd.f32 %v982_v7, %v423_v11  ;;  %v1054_v19 = vmul.f32 %v423_v11, %v423_v11 }
  0xe0   :  { %v435_v20 = vpop.f32.mrf.mxu0  ;;  %v444_v30 = vadd.f32 %v1629_v12, %v1893_v37  ;;  %1565 = vst [vmem:[%s2260_s3 + $0x98] sm:$0xff] %v1485_v42   ;;  %v1480_v54 = vpack.c.bf16 %v1956_v47, %v1950_v38  ;;  %v563_v55 = vpop.f32.mrf.mxu1  ;;  %v1970_v56 = vadd.f32 %v1661_v48, %v1893_v37 }
  0xe1   :  { %1548 = vst [vmem:[%s2260_s3 + $0x10] sm:$0xff] %v1400_v17   ;;  %v984_v25 = vadd.f32 %v983_v18, %v428_v0  ;;  %v1117_v26 = vadd.f32 %v1116_v16, %v1054_v19  ;;  %v436_v27 = vadd.f32 %v1893_v37, %v435_v20  ;;  %v1982_v9 = vadd.f32 %v1893_v37, %v563_v55 }
  0xe2   :  { %v1630_v28 = vpop.f32.mrf.mxu0  ;;  %v1059_v57 = vmul.f32 %v444_v30, %v444_v30  ;;  %1564 = vst [vmem:[%s2260_s3 + $0x90] sm:$0xff] %v1480_v54   ;;  %v1662_v63 = vpop.f32.mrf.mxu1 }
  0xe3   :  { %v447_v31 = vadd.f32 %v1630_v28, %v1893_v37  ;;  %v1118_v34 = vadd.f32 %v1117_v26, %v1055_v24  ;;  %v985_v35 = vadd.f32 %v984_v25, %v431_v2  ;;  %v1057_v44 = vmul.f32 %v436_v27, %v436_v27 }
  0xe4   :  { %v438_v36 = vpop.f32.mrf.mxu0  ;;  %v1979_v2 = vadd.f32 %v1662_v63, %v1893_v37  ;;  %v566_v10 = vpop.f32.mrf.mxu1 }
  0xe5   :  { %v1415_v40 = vpack.c.bf16 %v447_v31, %v444_v30  ;;  %v439_v41 = vadd.f32 %v1893_v37, %v438_v36  ;;  %v986_v43 = vadd.f32 %v985_v35, %v436_v27  ;;  %v1119_v45 = vadd.f32 %v1118_v34, %v1056_v33 }
  0xe6   :  { %v1633_v46 = vpop.f32.mrf.mxu0  ;;  %v1060_v3 = vmul.f32 %v447_v31, %v447_v31  ;;  %v1495_v13 = vpack.c.bf16 %v1979_v2, %v1970_v56  ;;  %v1988_v19 = vadd.f32 %v1893_v37, %v566_v10  ;;  %v1665_v20 = vpop.f32.mrf.mxu1 }
  0xe7   :  { %1551 = vst [vmem:[%s2260_s3 + $0x28] sm:$0xff] %v1415_v40   ;;  %v1410_v49 = vpack.c.bf16 %v439_v41, %v436_v27  ;;  %v1058_v50 = vmul.f32 %v439_v41, %v439_v41  ;;  %v1120_v51 = vadd.f32 %v1119_v45, %v1057_v44  ;;  %v987_v52 = vadd.f32 %v986_v43, %v439_v41 }
  0xe8   :  { %v451_v53 = vpop.f32.mrf.mxu0  ;;  %v460_v0 = vadd.f32 %v1633_v46, %v1893_v37  ;;  %1567 = vst [vmem:[%s2260_s3 + $0xa8] sm:$0xff] %v1495_v13   ;;  %v1490_v27 = vpack.c.bf16 %v1988_v19, %v1982_v9  ;;  %v579_v28 = vpop.f32.mrf.mxu1  ;;  %v2002_v29 = vadd.f32 %v1665_v20, %v1893_v37 }
  0xe9   :  { %1550 = vst [vmem:[%s2260_s3 + $0x20] sm:$0xff] %v1410_v49   ;;  %v988_v58 = vadd.f32 %v987_v52, %v444_v30  ;;  %v1121_v59 = vadd.f32 %v1120_v51, %v1058_v50  ;;  %v452_v60 = vadd.f32 %v1893_v37, %v451_v53  ;;  %v2014_v46 = vadd.f32 %v1893_v37, %v579_v28 }
  0xea   :  { %v1634_v62 = vpop.f32.mrf.mxu0  ;;  %v1063_v30 = vmul.f32 %v460_v0, %v460_v0  ;;  %1566 = vst [vmem:[%s2260_s3 + $0xa0] sm:$0xff] %v1490_v27   ;;  %v1666_v36 = vpop.f32.mrf.mxu1 }
  0xeb   :  { %v463_v1 = vadd.f32 %v1634_v62, %v1893_v37  ;;  %v1122_v6 = vadd.f32 %v1121_v59, %v1059_v57  ;;  %v989_v7 = vadd.f32 %v988_v58, %v447_v31  ;;  %v1061_v16 = vmul.f32 %v452_v60, %v452_v60 }
  0xec   :  { %v454_v8 = vpop.f32.mrf.mxu0  ;;  %v2011_v41 = vadd.f32 %v1666_v36, %v1893_v37  ;;  %v582_v48 = vpop.f32.mrf.mxu1 }
  0xed   :  { %v1425_v11 = vpack.c.bf16 %v463_v1, %v460_v0  ;;  %v455_v12 = vadd.f32 %v1893_v37, %v454_v8  ;;  %v990_v15 = vadd.f32 %v989_v7, %v452_v60  ;;  %v1123_v17 = vadd.f32 %v1122_v6, %v1060_v3 }
  0xee   :  { %v1637_v18 = vpop.f32.mrf.mxu0  ;;  %v1064_v42 = vmul.f32 %v463_v1, %v463_v1  ;;  %v1505_v51 = vpack.c.bf16 %v2011_v41, %v2002_v29  ;;  %v2020_v57 = vadd.f32 %v1893_v37, %v582_v48  ;;  %v1669_v58 = vpop.f32.mrf.mxu1 }
  0xef   :  { %1553 = vst [vmem:[%s2260_s3 + $0x38] sm:$0xff] %v1425_v11   ;;  %v1420_v21 = vpack.c.bf16 %v455_v12, %v452_v60  ;;  %v1062_v22 = vmul.f32 %v455_v12, %v455_v12  ;;  %v1124_v24 = vadd.f32 %v1123_v17, %v1061_v16  ;;  %v991_v25 = vadd.f32 %v990_v15, %v455_v12 }
  0xf0   :  { %v467_v26 = vpop.f32.mrf.mxu0  ;;  %v476_v39 = vadd.f32 %v1637_v18, %v1893_v37  ;;  %1569 = vst [vmem:[%s2260_s3 + $0xb8] sm:$0xff] %v1505_v51   ;;  %v595_v3 = vpop.f32.mrf.mxu1  ;;  %v2034_v6 = vadd.f32 %v1669_v58, %v1893_v37 }
  0xf1   :  { %1552 = vst [vmem:[%s2260_s3 + $0x30] sm:$0xff] %v1420_v21   ;;  %v992_v31 = vadd.f32 %v991_v25, %v460_v0  ;;  %v1125_v33 = vadd.f32 %v1124_v24, %v1062_v22  ;;  %v468_v34 = vadd.f32 %v1893_v37, %v467_v26  ;;  %v2046_v24 = vadd.f32 %v1893_v37, %v595_v3 }
  0xf2   :  { %v1638_v35 = vpop.f32.mrf.mxu0  ;;  %v1067_v7 = vmul.f32 %v476_v39, %v476_v39  ;;  %v1670_v13 = vpop.f32.mrf.mxu1 }
  0xf3   :  { %v479_v40 = vadd.f32 %v1638_v35, %v1893_v37  ;;  %v1126_v43 = vadd.f32 %v1125_v33, %v1063_v30  ;;  %v993_v44 = vadd.f32 %v992_v31, %v463_v1  ;;  %v1065_v53 = vmul.f32 %v468_v34, %v468_v34 }
  0xf4   :  { %v470_v45 = vpop.f32.mrf.mxu0  ;;  %v1500_v1 = vpack.c.bf16 %v2020_v57, %v2014_v46  ;;  %v2043_v17 = vadd.f32 %v1670_v13, %v1893_v37  ;;  %v598_v25 = vpop.f32.mrf.mxu1 }
  0xf5   :  { %v1435_v49 = vpack.c.bf16 %v479_v40, %v476_v39  ;;  %v471_v50 = vadd.f32 %v1893_v37, %v470_v45  ;;  %v994_v52 = vadd.f32 %v993_v44, %v468_v34  ;;  %v1127_v54 = vadd.f32 %v1126_v43, %v1064_v42 }
  0xf6   :  { %v1641_v55 = vpop.f32.mrf.mxu0  ;;  %1568 = vst [vmem:[%s2260_s3 + $0xb0] sm:$0xff] %v1500_v1   ;;  %v1068_v18 = vmul.f32 %v479_v40, %v479_v40  ;;  %v1515_v28 = vpack.c.bf16 %v2043_v17, %v2034_v6  ;;  %v2052_v35 = vadd.f32 %v1893_v37, %v598_v25  ;;  %v1673_v36 = vpop.f32.mrf.mxu1 }
  0xf7   :  { %1555 = vst [vmem:[%s2260_s3 + $0x48] sm:$0xff] %v1435_v49   ;;  %v1430_v59 = vpack.c.bf16 %v471_v50, %v468_v34  ;;  %v1066_v60 = vmul.f32 %v471_v50, %v471_v50  ;;  %v1128_v62 = vadd.f32 %v1127_v54, %v1065_v53  ;;  %v995_v63 = vadd.f32 %v994_v52, %v471_v50 }
  0xf8   :  { %v483_v0 = vpop.f32.mrf.mxu0  ;;  %v492_v15 = vadd.f32 %v1641_v55, %v1893_v37  ;;  %1571 = vst [vmem:[%s2260_s3 + $0xc8] sm:$0xff] %v1515_v28   ;;  %v1510_v45 = vpack.c.bf16 %v2052_v35, %v2046_v24  ;;  %v611_v48 = vpop.f32.mrf.mxu1  ;;  %v2066_v49 = vadd.f32 %v1673_v36, %v1893_v37 }
  0xf9   :  { %1554 = vst [vmem:[%s2260_s3 + $0x40] sm:$0xff] %v1430_v59   ;;  %v996_v8 = vadd.f32 %v995_v63, %v476_v39  ;;  %v1129_v10 = vadd.f32 %v1128_v62, %v1066_v60  ;;  %v484_v11 = vadd.f32 %v1893_v37, %v483_v0  ;;  %v2078_v3 = vadd.f32 %v1893_v37, %v611_v48 }
  0xfa   :  { %v1642_v12 = vpop.f32.mrf.mxu0  ;;  %v1071_v50 = vmul.f32 %v492_v15, %v492_v15  ;;  %1570 = vst [vmem:[%s2260_s3 + $0xc0] sm:$0xff] %v1510_v45   ;;  %v1674_v55 = vpop.f32.mrf.mxu1 }
  0xfb   :  { %v495_v16 = vadd.f32 %v1642_v12, %v1893_v37  ;;  %v1130_v20 = vadd.f32 %v1129_v10, %v1067_v7  ;;  %v997_v21 = vadd.f32 %v996_v8, %v479_v40  ;;  %v1069_v31 = vmul.f32 %v484_v11, %v484_v11 }
  0xfc   :  { %v486_v22 = vpop.f32.mrf.mxu0  ;;  %v2075_v60 = vadd.f32 %v1674_v55, %v1893_v37  ;;  %v614_v7 = vpop.f32.mrf.mxu1 }
  0xfd   :  { %v1445_v26 = vpack.c.bf16 %v495_v16, %v492_v15  ;;  %v487_v27 = vadd.f32 %v1893_v37, %v486_v22  ;;  %v998_v30 = vadd.f32 %v997_v21, %v484_v11  ;;  %v1131_v33 = vadd.f32 %v1130_v20, %v1068_v18 }
  0xfe   :  { %v1645_v34 = vpop.f32.mrf.mxu0  ;;  %v1072_v62 = vmul.f32 %v495_v16, %v495_v16  ;;  %v2084_v20 = vadd.f32 %v1893_v37, %v614_v7  ;;  %v1677_v21 = vpop.f32.mrf.mxu1 }
  0xff   :  { %1557 = vst [vmem:[%s2260_s3 + $0x58] sm:$0xff] %v1445_v26   ;;  %v1440_v39 = vpack.c.bf16 %v487_v27, %v484_v11  ;;  %v1070_v40 = vmul.f32 %v487_v27, %v487_v27  ;;  %v1132_v42 = vadd.f32 %v1131_v33, %v1069_v31  ;;  %v999_v43 = vadd.f32 %v998_v30, %v487_v27 }
 0x100   :  { %v499_v44 = vpop.f32.mrf.mxu0  ;;  %v508_v58 = vadd.f32 %v1645_v34, %v1893_v37  ;;  %v1525_v11 = vpack.c.bf16 %v2075_v60, %v2066_v49  ;;  %v1520_v28 = vpack.c.bf16 %v2084_v20, %v2078_v3  ;;  %v627_v30 = vpop.f32.mrf.mxu1  ;;  %v2098_v31 = vadd.f32 %v1677_v21, %v1893_v37 }
 0x101   :  { %1556 = vst [vmem:[%s2260_s3 + $0x50] sm:$0xff] %v1440_v39   ;;  %v1000_v51 = vadd.f32 %v999_v43, %v492_v15  ;;  %v1133_v52 = vadd.f32 %v1132_v42, %v1070_v40  ;;  %v500_v53 = vadd.f32 %v1893_v37, %v499_v44 }
 0x102   :  { %v1646_v54 = vpop.f32.mrf.mxu0  ;;  %1573 = vst [vmem:[%s2260_s3 + $0xd8] sm:$0xff] %v1525_v11   ;;  %v1075_v33 = vmul.f32 %v508_v58, %v508_v58  ;;  %1572 = vst [vmem:[%s2260_s3 + $0xd0] sm:$0xff] %v1520_v28   ;;  %v1678_v42 = vpop.f32.mrf.mxu1 }
 0x103   :  { %v511_v59 = vadd.f32 %v1646_v54, %v1893_v37  ;;  %v1134_v63 = vadd.f32 %v1133_v52, %v1071_v50  ;;  %v1001_v0 = vadd.f32 %v1000_v51, %v495_v16  ;;  %v1073_v13 = vmul.f32 %v500_v53, %v500_v53 }
 0x104   :  { %v502_v1 = vpop.f32.mrf.mxu0  ;;  %v2107_v45 = vadd.f32 %v1678_v42, %v1893_v37  ;;  %v630_v54 = vpop.f32.mrf.mxu1 }
 0x105   :  { %v1455_v8 = vpack.c.bf16 %v511_v59, %v508_v58  ;;  %v503_v10 = vadd.f32 %v1893_v37, %v502_v1  ;;  %v1002_v12 = vadd.f32 %v1001_v0, %v500_v53  ;;  %v1135_v15 = vadd.f32 %v1134_v63, %v1072_v62 }
 0x106   :  { %v1649_v18 = vpop.f32.mrf.mxu0  ;;  %v1076_v48 = vmul.f32 %v511_v59, %v511_v59  ;;  %v1535_v62 = vpack.c.bf16 %v2107_v45, %v2098_v31  ;;  %v2116_v7 = vadd.f32 %v1893_v37, %v630_v54  ;;  %v1084_v54 = vmul.f32 %v1918_v5, %v1918_v5 }
 0x107   :  { %1559 = vst [vmem:[%s2260_s3 + $0x68] sm:$0xff] %v1455_v8   ;;  %v1450_v16 = vpack.c.bf16 %v503_v10, %v500_v53  ;;  %v1074_v22 = vmul.f32 %v503_v10, %v503_v10  ;;  %v1136_v25 = vadd.f32 %v1135_v15, %v1073_v13  ;;  %v1003_v26 = vadd.f32 %v1002_v12, %v503_v10  ;;  %v1681_v8 = vpop.f32.mrf.mxu1 }
 0x108   :  { %v515_v27 = vpop.f32.mrf.mxu0  ;;  %v524_v43 = vadd.f32 %v1649_v18, %v1893_v37  ;;  %v2110_v53 = vadd.f32 %v1893_v37, %v627_v30  ;;  %1575 = vst [vmem:[%s2260_s3 + $0xe8] sm:$0xff] %v1535_v62   ;;  %v2130_v18 = vadd.f32 %v1681_v8, %v1893_v37  ;;  %v1086_v8 = vmul.f32 %v1956_v47, %v1956_v47 }
 0x109   :  { %1558 = vst [vmem:[%s2260_s3 + $0x60] sm:$0xff] %v1450_v16   ;;  %v1004_v34 = vadd.f32 %v1003_v26, %v508_v58  ;;  %v1137_v36 = vadd.f32 %v1136_v25, %v1074_v22  ;;  %v516_v39 = vadd.f32 %v1893_v37, %v515_v27  ;;  %v643_v15 = vpop.f32.mrf.mxu1 }
 0x10a   :  { %v1650_v40 = vpop.f32.mrf.mxu0  ;;  %v1530_v13 = vpack.c.bf16 %v2116_v7, %v2110_v53  ;;  %v1079_v21 = vmul.f32 %v524_v43, %v524_v43  ;;  %v2136_v26 = vadd.f32 %v1893_v37, %v643_v15 }
 0x10b   :  { %v527_v44 = vadd.f32 %v1650_v40, %v1893_v37  ;;  %v1138_v50 = vadd.f32 %v1137_v36, %v1075_v33  ;;  %v1005_v51 = vadd.f32 %v1004_v34, %v511_v59  ;;  %v1077_v0 = vmul.f32 %v516_v39, %v516_v39  ;;  %v1682_v25 = vpop.f32.mrf.mxu1 }
 0x10c   :  { %v518_v52 = vpop.f32.mrf.mxu0  ;;  %1574 = vst [vmem:[%s2260_s3 + $0xe0] sm:$0xff] %v1530_v13   ;;  %v2139_v27 = vadd.f32 %v1682_v25, %v1893_v37  ;;  %v1081_v40 = vmul.f32 %v1915_v4, %v1915_v4  ;;  %v1089_v13 = vmul.f32 %v1982_v9, %v1982_v9 }
 0x10d   :  { %v1465_v55 = vpack.c.bf16 %v527_v44, %v524_v43  ;;  %v519_v58 = vadd.f32 %v1893_v37, %v518_v52  ;;  %v1006_v63 = vadd.f32 %v1005_v51, %v516_v39  ;;  %v1139_v1 = vadd.f32 %v1138_v50, %v1076_v48  ;;  %v646_v34 = vpop.f32.mrf.mxu1 }
 0x10e   :  { %v1080_v28 = vmul.f32 %v527_v44, %v527_v44  ;;  %v1545_v36 = vpack.c.bf16 %v2139_v27, %v2130_v18  ;;  %v1082_v50 = vmul.f32 %v1924_v14, %v1924_v14 }
 0x10f   :  { %1561 = vst [vmem:[%s2260_s3 + $0x78] sm:$0xff] %v1465_v55   ;;  %v1460_v59 = vpack.c.bf16 %v519_v58, %v516_v39  ;;  %v1078_v10 = vmul.f32 %v519_v58, %v519_v58  ;;  %v1140_v11 = vadd.f32 %v1139_v1, %v1077_v0  ;;  %v1007_v12 = vadd.f32 %v1006_v63, %v519_v58 }
 0x110   :  { %v2144_v39 = vadd.f32 %v1893_v37, %v646_v34  ;;  %1577 = vst [vmem:[%s2260_s3 + $0xf8] sm:$0xff] %v1545_v36  }
 0x111   :  { %1560 = vst [vmem:[%s2260_s3 + $0x70] sm:$0xff] %v1460_v59   ;;  %v1008_v16 = vadd.f32 %v1007_v12, %v524_v43  ;;  %v1141_v22 = vadd.f32 %v1140_v11, %v1078_v10 }
 0x113   :  { %v1142_v30 = vadd.f32 %v1141_v22, %v1079_v21  ;;  %v1009_v33 = vadd.f32 %v1008_v16, %v527_v44  ;;  %v1540_v44 = vpack.c.bf16 %v2144_v39, %v2136_v26  ;;  %v1090_v16 = vmul.f32 %v1988_v19, %v1988_v19 }
 0x115   :  { %v1010_v42 = vadd.f32 %v1009_v33, %v1915_v4  ;;  %v1143_v43 = vadd.f32 %v1142_v30, %v1080_v28  ;;  %1576 = vst [vmem:[%s2260_s3 + $0xf0] sm:$0xff] %v1540_v44   ;;  %v1083_v4 = vmul.f32 %v1910_v61, %v1910_v61  ;;  %v1093_v33 = vmul.f32 %v2014_v46, %v2014_v46 }
 0x117   :  { %v1011_v48 = vadd.f32 %v1010_v42, %v1924_v14  ;;  %v1144_v37 = vadd.f32 %v1143_v43, %v1081_v40  ;;  %v1085_v14 = vmul.f32 %v1950_v38, %v1950_v38  ;;  %v1094_v40 = vmul.f32 %v2020_v57, %v2020_v57 }
 0x119   :  { %v1012_v51 = vadd.f32 %v1011_v48, %v1910_v61  ;;  %v1145_v52 = vadd.f32 %v1144_v37, %v1082_v50  ;;  %v1087_v61 = vmul.f32 %v1935_v23, %v1935_v23  ;;  %v1097_v50 = vmul.f32 %v2046_v24, %v2046_v24 }
 0x11b   :  { %v1146_v55 = vadd.f32 %v1145_v52, %v1083_v4  ;;  %v1013_v58 = vadd.f32 %v1012_v51, %v1918_v5  ;;  %v1088_v5 = vmul.f32 %v1947_v32, %v1947_v32  ;;  %v1098_v51 = vmul.f32 %v2052_v35, %v2052_v35 }
 0x11d   :  { %v1014_v62 = vadd.f32 %v1013_v58, %v1950_v38  ;;  %v1147_v63 = vadd.f32 %v1146_v55, %v1084_v54 }
 0x11f   :  { %v1148_v0 = vadd.f32 %v1147_v63, %v1085_v14  ;;  %v1015_v1 = vadd.f32 %v1014_v62, %v1956_v47  ;;  %v1101_v62 = vmul.f32 %v2078_v3, %v2078_v3 }
 0x121   :  { %v1016_v59 = vadd.f32 %v1015_v1, %v1935_v23  ;;  %v1149_v10 = vadd.f32 %v1148_v0, %v1086_v8  ;;  %v1091_v23 = vmul.f32 %v1970_v56, %v1970_v56  ;;  %v1102_v0 = vmul.f32 %v2084_v20, %v2084_v20 }
 0x123   :  { %v1150_v11 = vadd.f32 %v1149_v10, %v1087_v61  ;;  %v1017_v12 = vadd.f32 %v1016_v59, %v1947_v32  ;;  %v1092_v32 = vmul.f32 %v1979_v2, %v1979_v2  ;;  %v1105_v10 = vmul.f32 %v2110_v53, %v2110_v53 }
 0x125   :  { %v1018_v38 = vadd.f32 %v1017_v12, %v1982_v9  ;;  %v1151_v15 = vadd.f32 %v1150_v11, %v1088_v5  ;;  %v1106_v12 = vmul.f32 %v2116_v7, %v2116_v7 }
 0x127   :  { %v1152_v21 = vadd.f32 %v1151_v15, %v1089_v13  ;;  %v1019_v47 = vadd.f32 %v1018_v38, %v1988_v19 }
 0x129   :  { %v1020_v22 = vadd.f32 %v1019_v47, %v1970_v56  ;;  %v1153_v25 = vadd.f32 %v1152_v21, %v1090_v16  ;;  %v1095_v56 = vmul.f32 %v2002_v29, %v2002_v29  ;;  %v1109_v47 = vmul.f32 %v2136_v26, %v2136_v26 }
 0x12b   :  { %v1154_v28 = vadd.f32 %v1153_v25, %v1091_v23  ;;  %v1021_v30 = vadd.f32 %v1020_v22, %v1979_v2  ;;  %v1096_v2 = vmul.f32 %v2011_v41, %v2011_v41  ;;  %v1110_v22 = vmul.f32 %v2144_v39, %v2144_v39 }
 0x12d   :  { %v1022_v9 = vadd.f32 %v1021_v30, %v2014_v46  ;;  %v1155_v34 = vadd.f32 %v1154_v28, %v1092_v32 }
 0x12f   :  { %v1156_v36 = vadd.f32 %v1155_v34, %v1093_v33  ;;  %v1023_v19 = vadd.f32 %v1022_v9, %v2020_v57 }
 0x131   :  { %v1024_v42 = vadd.f32 %v1023_v19, %v2002_v29  ;;  %v1157_v43 = vadd.f32 %v1156_v36, %v1094_v40  ;;  %v1099_v29 = vmul.f32 %v2034_v6, %v2034_v6 }
 0x133   :  { %v1158_v44 = vadd.f32 %v1157_v43, %v1095_v56  ;;  %v1025_v48 = vadd.f32 %v1024_v42, %v2011_v41  ;;  %v1100_v41 = vmul.f32 %v2043_v17, %v2043_v17 }
 0x135   :  { %v1026_v46 = vadd.f32 %v1025_v48, %v2046_v24  ;;  %v1159_v37 = vadd.f32 %v1158_v44, %v1096_v2 }
 0x137   :  { %v1160_v4 = vadd.f32 %v1159_v37, %v1097_v50  ;;  %v1027_v57 = vadd.f32 %v1026_v46, %v2052_v35 }
 0x139   :  { %v1028_v52 = vadd.f32 %v1027_v57, %v2034_v6  ;;  %v1161_v54 = vadd.f32 %v1160_v4, %v1098_v51  ;;  %v1103_v6 = vmul.f32 %v2066_v49, %v2066_v49 }
 0x13b   :  { %v1162_v55 = vadd.f32 %v1161_v54, %v1099_v29  ;;  %v1029_v58 = vadd.f32 %v1028_v52, %v2043_v17  ;;  %v1104_v17 = vmul.f32 %v2075_v60, %v2075_v60 }
 0x13d   :  { %v1030_v24 = vadd.f32 %v1029_v58, %v2078_v3  ;;  %v1163_v14 = vadd.f32 %v1162_v55, %v1100_v41 }
 0x13f   :  { %v1164_v63 = vadd.f32 %v1163_v14, %v1101_v62  ;;  %v1031_v35 = vadd.f32 %v1030_v24, %v2084_v20 }
 0x141   :  { %v1032_v1 = vadd.f32 %v1031_v35, %v2066_v49  ;;  %v1165_v8 = vadd.f32 %v1164_v63, %v1102_v0  ;;  %v1107_v49 = vmul.f32 %v2098_v31, %v2098_v31 }
 0x143   :  { %v1166_v61 = vadd.f32 %v1165_v8, %v1103_v6  ;;  %v1033_v59 = vadd.f32 %v1032_v1, %v2075_v60  ;;  %v1108_v60 = vmul.f32 %v2107_v45, %v2107_v45 }
 0x145   :  { %v1034_v3 = vadd.f32 %v1033_v59, %v2110_v53  ;;  %v1167_v5 = vadd.f32 %v1166_v61, %v1104_v17 }
 0x147   :  { %v1168_v11 = vadd.f32 %v1167_v5, %v1105_v10  ;;  %v1035_v20 = vadd.f32 %v1034_v3, %v2116_v7 }
 0x149   :  { %v1036_v38 = vadd.f32 %v1035_v20, %v2098_v31  ;;  %v1169_v13 = vadd.f32 %v1168_v11, %v1106_v12  ;;  %v1111_v31 = vmul.f32 %v2130_v18, %v2130_v18 }
 0x14b   :  { %v1170_v15 = vadd.f32 %v1169_v13, %v1107_v49  ;;  %v1037_v21 = vadd.f32 %v1036_v38, %v2107_v45  ;;  %v1112_v45 = vmul.f32 %v2139_v27, %v2139_v27 }
 0x14d   :  { %v1038_v53 = vadd.f32 %v1037_v21, %v2136_v26  ;;  %v1171_v16 = vadd.f32 %v1170_v15, %v1108_v60 }
 0x14f   :  { %v1172_v23 = vadd.f32 %v1171_v16, %v1109_v47  ;;  %v1039_v7 = vadd.f32 %v1038_v53, %v2144_v39 }
 0x151   :  { %v1040_v25 = vadd.f32 %v1039_v7, %v2130_v18  ;;  %v1173_v32 = vadd.f32 %v1172_v23, %v1110_v22 }
 0x153   :  { %v1041_v28 = vadd.f32 %v1040_v25, %v2139_v27  ;;  %v1174_v30 = vadd.f32 %v1173_v32, %v1111_v31 }
 0x155   :  { %v1042_v26 = vrot.slane %v1041_v28, 4  ;;  %v1175_v9 = vadd.f32 %v1174_v30, %v1112_v45 }
 0x157   :  { %v1043_v33 = vadd.f32 %v1042_v26, %v1041_v28  ;;  %v1176_v34 = vrot.slane %v1175_v9, 4 }
 0x159   :  { %v1044_v36 = vrot.slane %v1043_v33, 2  ;;  %v1177_v19 = vadd.f32 %v1176_v34, %v1175_v9 }
 0x15b   :  { %v1045_v40 = vadd.f32 %v1044_v36, %v1043_v33  ;;  %v1178_v39 = vrot.slane %v1177_v19, 2 }
 0x15d   :  { %v1046_v56 = vrot.slane %v1045_v40, 1  ;;  %v1179_v42 = vadd.f32 %v1178_v39, %v1177_v19 }
 0x15f   :  { %v1047_v43 = vadd.f32 %v1046_v56, %v1045_v40  ;;  %v1180_v2 = vrot.slane %v1179_v42, 1 }
 0x161   :  { %1048 = vst [vmem:[%s2259_s4] sm:$0x1] %v1047_v43  ;;  %v1181_v18 = vadd.f32 %v1180_v2, %v1179_v42 }
 0x163   :  { %1182 = vst [vmem:[%s2259_s4 + $0x1] sm:$0x1] %v1181_v18 }

</bundles_post_ra>
